<compile_context>
chip_gen: v7x
topology: tpu7x:2x2x1
jax: 0.10.0
libtpu: 0.0.40
codegen_flags: <defaults>
</compile_context>

<pallas_src>
import functools
import math

import jax
import jax.numpy as jnp
from jax import lax
from jax.experimental import pallas as pl
from jax.experimental.pallas import tpu as pltpu


# ----------------------------- in-kernel helpers -----------------------------

def _softplus(x):
    return jnp.maximum(x, 0.0) + jnp.log(1.0 + jnp.exp(-jnp.abs(x)))


def _rmsnorm(x, gamma_p1, eps=1e-12):
    # lucidrains RMSNorm: F.normalize(x, dim=-1) * sqrt(d) * (gamma + 1)
    d = x.shape[-1]
    ss = jnp.sum(x * x, axis=-1, keepdims=True)
    inv = lax.rsqrt(jnp.maximum(ss, eps * eps))          # 1 / max(||x||, eps)
    return x * (inv * math.sqrt(d)) * gamma_p1


def _per_head_norm(x, seg_t, gamma_p1_full, dim_head, eps=1e-12):
    # Per-head RMSNorm(dim_head), computed lane-dense on the (N, H*dh) slab.
    # seg_t[h, i] = 1.0 iff i // dim_head == h.
    ss = lax.dot_general(x * x, seg_t, (((1,), (1,)), ((), ())),
                         preferred_element_type=jnp.float32)             # (N, H)
    scale = lax.rsqrt(jnp.maximum(ss, eps * eps)) * math.sqrt(dim_head)
    scale_full = jnp.dot(scale, seg_t, preferred_element_type=jnp.float32)  # (N, H*dh)
    return x * scale_full * gamma_p1_full


# ----------------------------- fused layer kernel -----------------------------

def hybrid_layer_kernel(
        x_ref, tri_ref, seg_ref,
        norm_g_ref, w_hg_ref, w_rnn_out_ref, w_qkv_ref,
        rnn_g_ref, attn_g_ref, w_out_ref,
        ff_g_ref, w1_ref, b1_ref, w2_ref, b2_ref,
        o_ref,
        lc_ref, lv_ref, h_ref, kh_ref, vh_ref,
        *, heads, dim_head, chunk):
    x = x_ref[0]                                    # (N, D) f32
    N, _ = x.shape
    Di = heads * dim_head                           # == D for this module
    n_chunks = N // chunk
    tri = tri_ref[...]                              # (T, T) inclusive lower-triangular
    seg_t = seg_ref[...]                            # (H, Di) one-hot head map

    # ---------------- pre-norm + fused projections (bf16 on the MXU) ----------
    xn_b = _rmsnorm(x, norm_g_ref[...]).astype(jnp.bfloat16)
    hg = jnp.dot(xn_b, w_hg_ref[...], preferred_element_type=jnp.float32)    # (N, 2*Di)
    qkv = jnp.dot(xn_b, w_qkv_ref[...], preferred_element_type=jnp.float32)  # (N, 3*Di)

    # ---------------- MinGRU: chunked log-space associative scan --------------
    hidden = hg[:, :Di]
    gate = hg[:, Di:]
    lc_ref[...] = -_softplus(gate)                        # log(1 - z)
    lv_ref[...] = -_softplus(-gate) + jnp.where(          # log z + log g(h_tilde)
        hidden >= 0.0,
        jnp.log(jnp.maximum(hidden, 0.0) + 0.5),
        -_softplus(-hidden))

    def scan_chunk(c, h_prev):                            # h_prev: (1, Di) f32
        start = pl.multiple_of(c * chunk, chunk)
        lc = lc_ref[pl.ds(start, chunk), :]
        lv = lv_ref[pl.ds(start, chunk), :]
        a_loc = jnp.dot(tri, lc, preferred_element_type=jnp.float32)   # in-chunk cumsum
        v = lv - a_loc
        m = jnp.max(v, axis=0, keepdims=True)                          # stabilizer
        cum = jnp.dot(tri, jnp.exp(v - m), preferred_element_type=jnp.float32)
        h_new = jnp.exp(a_loc) * h_prev + jnp.exp(a_loc + m + jnp.log(cum))
        h_ref[pl.ds(start, chunk), :] = h_new
        return h_new[chunk - 1:chunk, :]                  # carry last hidden state

    lax.fori_loop(0, n_chunks, scan_chunk, jnp.zeros((1, Di), jnp.float32))

    rnn_out = jnp.dot(h_ref[...].astype(jnp.bfloat16), w_rnn_out_ref[...],
                      preferred_element_type=jnp.float32)               # (N, D)

    # --------- attention: head-batched matmuls + flash-style KV chunking ------
    def heads_major(x2d):   # (N, H*dh) -> (H, N, dh); one-time layout plumbing
        return jnp.stack(
            [x2d[:, h * dim_head:(h + 1) * dim_head] for h in range(heads)], axis=0)

    scale = 1.0 / math.sqrt(dim_head)
    q_h = (heads_major(qkv[:, :Di]) * scale).astype(jnp.bfloat16)        # (H, N, dh)
    kh_ref[...] = heads_major(qkv[:, Di:2 * Di]).astype(jnp.bfloat16)
    vh_ref[...] = heads_major(qkv[:, 2 * Di:]).astype(jnp.bfloat16)

    def kv_chunk(c, carry):
        m_i, l_i, acc = carry
        start = pl.multiple_of(c * chunk, chunk)
        kb = kh_ref[:, pl.ds(start, chunk), :]                           # (H, T, dh)
        vb = vh_ref[:, pl.ds(start, chunk), :]
        s = jnp.einsum('hnd,hkd->hnk', q_h, kb,
                       preferred_element_type=jnp.float32)               # (H, N, T)
        m_new = jnp.maximum(m_i, jnp.max(s, axis=-1, keepdims=True))
        alpha = jnp.exp(m_i - m_new)
        p = jnp.exp(s - m_new)
        l_new = alpha * l_i + jnp.sum(p, axis=-1, keepdims=True)
        pv = jnp.einsum('hnk,hkd->hnd', p.astype(jnp.bfloat16), vb,
                        preferred_element_type=jnp.float32)              # (H, N, dh)
        return m_new, l_new, alpha * acc + pv

    m0 = jnp.full((heads, N, 1), -jnp.inf, jnp.float32)
    l0 = jnp.zeros((heads, N, 1), jnp.float32)
    a0 = jnp.zeros((heads, N, dim_head), jnp.float32)
    _, l_f, acc = lax.fori_loop(0, n_chunks, kv_chunk, (m0, l0, a0))
    attn = acc * pl.reciprocal(l_f, approx=True)                         # (H, N, dh)
    attn2d = jnp.concatenate([attn[h] for h in range(heads)], axis=-1)   # (N, Di)

    # ----- mix (learned_mix=False -> 0.5), per-head norms, output projection ---
    mixed = 0.5 * _per_head_norm(rnn_out, seg_t, rnn_g_ref[...], dim_head) \
          + 0.5 * _per_head_norm(attn2d, seg_t, attn_g_ref[...], dim_head)
    y = jnp.dot(mixed.astype(jnp.bfloat16), w_out_ref[...],
                preferred_element_type=jnp.float32)                      # (N, D)
    x_mid = x + y                                                        # residual 1

    # ------------------------------- feed-forward ------------------------------
    xf = _rmsnorm(x_mid, ff_g_ref[...]).astype(jnp.bfloat16)
    h1 = jnp.dot(xf, w1_ref[...], preferred_element_type=jnp.float32) + b1_ref[...]
    # TODO(synk): PyTorch nn.GELU() is exact erf-GELU; tanh approximation is used
    # here because erf lowering support in Mosaic is not guaranteed.
    h1 = jax.nn.gelu(h1, approximate=True)
    y2 = jnp.dot(h1.astype(jnp.bfloat16), w2_ref[...],
                 preferred_element_type=jnp.float32) + b2_ref[...]
    o_ref[0] = (x_mid + y2).astype(o_ref.dtype)                          # residual 2


def final_norm_kernel(x_ref, g_ref, o_ref):
    o_ref[0] = _rmsnorm(x_ref[0], g_ref[...]).astype(o_ref.dtype)


# ------------------------------- python wrappers ------------------------------

def _full_spec(shape):
    return pl.BlockSpec(shape, lambda b, n=len(shape): (0,) * n)


def _batched_spec(N, D):
    return pl.BlockSpec((1, N, D), lambda b: (b, 0, 0))


def hybrid_ff_layer(x, p, consts, heads, dim_head, chunk):
    B, N, D = x.shape
    dim_inner = heads * dim_head
    kern = functools.partial(hybrid_layer_kernel,
                             heads=heads, dim_head=dim_head, chunk=chunk)
    args = (x, consts["tri"], consts["seg_t"],
            p["norm_g1"], p["w_hg"], p["w_rnn_out"], p["w_qkv"],
            p["rnn_g1"], p["attn_g1"], p["w_out"],
            p["ff_g1"], p["w1"], p["b1"], p["w2"], p["b2"])
    in_specs = [_batched_spec(N, D)] + [_full_spec(a.shape) for a in args[1:]]
    return pl.pallas_call(
        kern,
        out_shape=jax.ShapeDtypeStruct((B, N, D), x.dtype),
        grid=(B,),
        in_specs=in_specs,
        out_specs=_batched_spec(N, D),
        scratch_shapes=[
            pltpu.VMEM((N, dim_inner), jnp.float32),              # log_coeffs
            pltpu.VMEM((N, dim_inner), jnp.float32),              # log_values
            pltpu.VMEM((N, dim_inner), jnp.float32),              # scan hidden states
            pltpu.VMEM((heads, N, dim_head), jnp.bfloat16),       # K (head-major)
            pltpu.VMEM((heads, N, dim_head), jnp.bfloat16),       # V (head-major)
        ],
        compiler_params=pltpu.CompilerParams(
            dimension_semantics=("parallel",),
            vmem_limit_bytes=64 * 1024 * 1024),
    )(*args)


def final_norm(x, g1):
    B, N, D = x.shape
    return pl.pallas_call(
        final_norm_kernel,
        out_shape=jax.ShapeDtypeStruct((B, N, D), x.dtype),
        grid=(B,),
        in_specs=[_batched_spec(N, D), _full_spec(g1.shape)],
        out_specs=_batched_spec(N, D),
        compiler_params=pltpu.CompilerParams(dimension_semantics=("parallel",)),
    )(x, g1)


def _pick_chunk(n):
    for t in (256, 128, 64, 32, 16, 8):
        if n >= t and n % t == 0:
            return t
    return n            # fallback: single chunk


def hybrid_wrapper_forward(x, params, heads, dim_head):
    B, N, D = x.shape
    assert D == heads * dim_head, "HybridWrapper assumes dim == heads * dim_head"
    chunk = _pick_chunk(N)
    idx = jnp.arange(chunk)
    consts = dict(
        tri=(idx[None, :] <= idx[:, None]).astype(jnp.float32),                   # (T, T)
        seg_t=jnp.repeat(jnp.eye(heads, dtype=jnp.float32), dim_head, axis=1),    # (H, H*dh)
    )
    for p in params["layers"]:
        x = hybrid_ff_layer(x, p, consts, heads, dim_head, chunk)  # hybrid + ff (+ residuals)
    return final_norm(x, params["final_g1"])                       # embed = norm(x)


# ------------------------------- parameter setup ------------------------------

def init_params(key, dim, depth, heads, dim_head, ff_mult):
    """Raw f32 parameters matching the PyTorch module (RMSNorm gammas init to 0)."""
    dim_inner = heads * dim_head
    ff_inner = int(dim * ff_mult)

    def linear(k, fan_in, fan_out):
        bound = 1.0 / math.sqrt(fan_in)            # torch.nn.Linear default init
        return jax.random.uniform(k, (fan_in, fan_out), jnp.float32, -bound, bound)

    layers = []
    for _ in range(depth):
        key, k0, k1, k2, k3, k4, k5 = jax.random.split(key, 7)
        layers.append(dict(
            norm_g=jnp.zeros((dim,), jnp.float32),
            w_hg=linear(k0, dim, 2 * dim_inner),      # MinGRU to_hidden_and_gate (no bias)
            w_rnn_out=linear(k1, dim_inner, dim),     # MinGRU proj_out (no bias)
            w_qkv=linear(k2, dim, 3 * dim_inner),     # to_qkv (no bias)
            rnn_g=jnp.zeros((dim_head,), jnp.float32),
            attn_g=jnp.zeros((dim_head,), jnp.float32),
            w_out=linear(k3, dim_inner, dim),         # to_out (no bias)
            ff_g=jnp.zeros((dim,), jnp.float32),
            w1=linear(k4, dim, ff_inner),
            b1=jnp.zeros((ff_inner,), jnp.float32),
            w2=linear(k5, ff_inner, dim),
            b2=jnp.zeros((dim,), jnp.float32),
        ))
    return dict(layers=layers, final_g=jnp.zeros((dim,), jnp.float32))


def prepare_params(raw, heads):
    """Kernel-ready params: bf16 matmul weights, (gamma+1) rows, head-tiled gammas."""
    def prep(p):
        return dict(
            norm_g1=(p["norm_g"] + 1.0).reshape(1, -1),
            w_hg=p["w_hg"].astype(jnp.bfloat16),
            w_rnn_out=p["w_rnn_out"].astype(jnp.bfloat16),
            w_qkv=p["w_qkv"].astype(jnp.bfloat16),
            rnn_g1=jnp.tile(p["rnn_g"] + 1.0, heads).reshape(1, -1),
            attn_g1=jnp.tile(p["attn_g"] + 1.0, heads).reshape(1, -1),
            w_out=p["w_out"].astype(jnp.bfloat16),
            ff_g1=(p["ff_g"] + 1.0).reshape(1, -1),
            w1=p["w1"].astype(jnp.bfloat16),
            b1=p["b1"].reshape(1, -1),
            w2=p["w2"].astype(jnp.bfloat16),
            b2=p["b2"].reshape(1, -1),
        )
    return dict(layers=[prep(p) for p in raw["layers"]],
                final_g1=(raw["final_g"] + 1.0).reshape(1, -1))


# ----------------------------------- main --------------------------------------

if __name__ == "__main__":
    B, N = 2, 8
    heads, dim_head = 2, 16
    dim = heads * dim_head            # 32 (module expects dim == heads * dim_head)
    depth, ff_mult = 2, 4

    key = jax.random.PRNGKey(0)
    kx, kp = jax.random.split(key)
    x = jax.random.normal(kx, (B, N, dim), jnp.float32)

    params = prepare_params(init_params(kp, dim, depth, heads, dim_head, ff_mult), heads)

    fwd = jax.jit(functools.partial(hybrid_wrapper_forward,
                                    heads=heads, dim_head=dim_head))
    out = jax.block_until_ready(fwd(x, params))

    assert out.shape == (B, N, dim)
    assert bool(jnp.all(jnp.isfinite(out)))
    print("KERNEL_OK")
</pallas_src>

<mosaic_0001>
module attributes {stable_mosaic.version = 11 : i64} {
  func.func @hybrid_layer_kernel(%arg0: i32, %arg1: memref<1x8x32xf32, #tpu.memory_space<vmem>>, %arg2: memref<8x8xf32, #tpu.memory_space<vmem>>, %arg3: memref<2x32xf32, #tpu.memory_space<vmem>>, %arg4: memref<1x32xf32, #tpu.memory_space<vmem>>, %arg5: memref<32x64xbf16, #tpu.memory_space<vmem>>, %arg6: memref<32x32xbf16, #tpu.memory_space<vmem>>, %arg7: memref<32x96xbf16, #tpu.memory_space<vmem>>, %arg8: memref<1x32xf32, #tpu.memory_space<vmem>>, %arg9: memref<1x32xf32, #tpu.memory_space<vmem>>, %arg10: memref<32x32xbf16, #tpu.memory_space<vmem>>, %arg11: memref<1x32xf32, #tpu.memory_space<vmem>>, %arg12: memref<32x128xbf16, #tpu.memory_space<vmem>>, %arg13: memref<1x128xf32, #tpu.memory_space<vmem>>, %arg14: memref<128x32xbf16, #tpu.memory_space<vmem>>, %arg15: memref<1x32xf32, #tpu.memory_space<vmem>>, %arg16: memref<1x8x32xf32, #tpu.memory_space<vmem>>, %arg17: memref<8x32xf32, #tpu.memory_space<vmem>>, %arg18: memref<8x32xf32, #tpu.memory_space<vmem>>, %arg19: memref<8x32xf32, #tpu.memory_space<vmem>>, %arg20: memref<2x8x16xbf16, #tpu.memory_space<vmem>>, %arg21: memref<2x8x16xbf16, #tpu.memory_space<vmem>>) attributes {dimension_semantics = [#tpu.dimension_semantics<parallel>], iteration_bounds = array<i64: 2>, scalar_prefetch = 0 : i64, scratch_operands = 5 : i64, tpu.core_type = #tpu.core_type<tc>, window_params = [{transform_indices = @transform_0, window_bounds = array<i64: 1, 8, 32>}, {pipeline_mode = #tpu.pipeline_mode<synchronous>, transform_indices = @transform_1, window_bounds = array<i64: 8, 8>}, {pipeline_mode = #tpu.pipeline_mode<synchronous>, transform_indices = @transform_2, window_bounds = array<i64: 2, 32>}, {pipeline_mode = #tpu.pipeline_mode<synchronous>, transform_indices = @transform_3, window_bounds = array<i64: 1, 32>}, {pipeline_mode = #tpu.pipeline_mode<synchronous>, transform_indices = @transform_4, window_bounds = array<i64: 32, 64>}, {pipeline_mode = #tpu.pipeline_mode<synchronous>, transform_indices = @transform_5, window_bounds = array<i64: 32, 32>}, {pipeline_mode = #tpu.pipeline_mode<synchronous>, transform_indices = @transform_6, window_bounds = array<i64: 32, 96>}, {pipeline_mode = #tpu.pipeline_mode<synchronous>, transform_indices = @transform_7, window_bounds = array<i64: 1, 32>}, {pipeline_mode = #tpu.pipeline_mode<synchronous>, transform_indices = @transform_8, window_bounds = array<i64: 1, 32>}, {pipeline_mode = #tpu.pipeline_mode<synchronous>, transform_indices = @transform_9, window_bounds = array<i64: 32, 32>}, {pipeline_mode = #tpu.pipeline_mode<synchronous>, transform_indices = @transform_10, window_bounds = array<i64: 1, 32>}, {pipeline_mode = #tpu.pipeline_mode<synchronous>, transform_indices = @transform_11, window_bounds = array<i64: 32, 128>}, {pipeline_mode = #tpu.pipeline_mode<synchronous>, transform_indices = @transform_12, window_bounds = array<i64: 1, 128>}, {pipeline_mode = #tpu.pipeline_mode<synchronous>, transform_indices = @transform_13, window_bounds = array<i64: 128, 32>}, {pipeline_mode = #tpu.pipeline_mode<synchronous>, transform_indices = @transform_14, window_bounds = array<i64: 1, 32>}, {transform_indices = @transform_15, window_bounds = array<i64: 1, 8, 32>}]} {
    %c0 = arith.constant 0 : index
    %c0_0 = arith.constant 0 : index
    %c0_1 = arith.constant 0 : index
    %0 = vector.load %arg1[%c0, %c0_0, %c0_1] : memref<1x8x32xf32, #tpu.memory_space<vmem>>, vector<1x8x32xf32>
    %1 = vector.shape_cast %0 : vector<1x8x32xf32> to vector<8x32xf32>
    %c0_2 = arith.constant 0 : index
    %c0_3 = arith.constant 0 : index
    %2 = vector.load %arg2[%c0_2, %c0_3] : memref<8x8xf32, #tpu.memory_space<vmem>>, vector<8x8xf32>
    %c0_4 = arith.constant 0 : index
    %c0_5 = arith.constant 0 : index
    %3 = vector.load %arg3[%c0_4, %c0_5] : memref<2x32xf32, #tpu.memory_space<vmem>>, vector<2x32xf32>
    %c0_6 = arith.constant 0 : index
    %c0_7 = arith.constant 0 : index
    %4 = vector.load %arg4[%c0_6, %c0_7] : memref<1x32xf32, #tpu.memory_space<vmem>>, vector<1x32xf32>
    %5 = arith.mulf %1, %1 : vector<8x32xf32>
    %cst = arith.constant dense<0.000000e+00> : vector<8xf32>
    %6 = vector.multi_reduction <add>, %5, %cst [1] : vector<8x32xf32> to vector<8xf32>
    %7 = vector.shape_cast %6 : vector<8xf32> to vector<8x1xf32>
    %cst_8 = arith.constant 1.000000e-24 : f32
    %8 = vector.broadcast %cst_8 : f32 to vector<8x1xf32>
    %9 = arith.maximumf %7, %8 : vector<8x1xf32>
    %10 = math.rsqrt %9 : vector<8x1xf32>
    %cst_9 = arith.constant 5.65685415 : f32
    %11 = vector.broadcast %cst_9 : f32 to vector<8x1xf32>
    %12 = arith.mulf %10, %11 : vector<8x1xf32>
    %13 = vector.broadcast %12 : vector<8x1xf32> to vector<8x32xf32>
    %14 = arith.mulf %1, %13 : vector<8x32xf32>
    %15 = vector.broadcast %4 : vector<1x32xf32> to vector<8x32xf32>
    %16 = arith.mulf %14, %15 : vector<8x32xf32>
    %17 = arith.truncf %16 : vector<8x32xf32> to vector<8x32xbf16>
    %c0_10 = arith.constant 0 : index
    %c0_11 = arith.constant 0 : index
    %18 = vector.load %arg5[%c0_10, %c0_11] : memref<32x64xbf16, #tpu.memory_space<vmem>>, vector<32x64xbf16>
    %cst_12 = arith.constant dense<0.000000e+00> : vector<8x64xf32>
    %19 = tpu.matmul %17, %18, %cst_12 {dimension_numbers = #tpu.dot_dimension_numbers<[1], [0], [0], [1], [0, 0, 1, 1], [], []>} : vector<8x32xbf16>, vector<32x64xbf16>, vector<8x64xf32> -> vector<8x64xf32>
    %c0_13 = arith.constant 0 : index
    %c0_14 = arith.constant 0 : index
    %20 = vector.load %arg7[%c0_13, %c0_14] : memref<32x96xbf16, #tpu.memory_space<vmem>>, vector<32x96xbf16>
    %cst_15 = arith.constant dense<0.000000e+00> : vector<8x96xf32>
    %21 = tpu.matmul %17, %20, %cst_15 {dimension_numbers = #tpu.dot_dimension_numbers<[1], [0], [0], [1], [0, 0, 1, 1], [], []>} : vector<8x32xbf16>, vector<32x96xbf16>, vector<8x96xf32> -> vector<8x96xf32>
    %22 = vector.extract_strided_slice %19 {offsets = [0, 0], sizes = [8, 32], strides = [1, 1]} : vector<8x64xf32> to vector<8x32xf32>
    %23 = vector.extract_strided_slice %19 {offsets = [0, 32], sizes = [8, 32], strides = [1, 1]} : vector<8x64xf32> to vector<8x32xf32>
    %cst_16 = arith.constant 0.000000e+00 : f32
    %24 = vector.broadcast %cst_16 : f32 to vector<8x32xf32>
    %25 = arith.maximumf %23, %24 : vector<8x32xf32>
    %26 = math.absf %23 : vector<8x32xf32>
    %cst_17 = arith.constant 0.000000e+00 : f32
    %27 = vector.broadcast %cst_17 : f32 to vector<8x32xf32>
    %28 = arith.subf %27, %26 : vector<8x32xf32>
    %29 = math.exp %28 : vector<8x32xf32>
    %cst_18 = arith.constant 1.000000e+00 : f32
    %30 = vector.broadcast %cst_18 : f32 to vector<8x32xf32>
    %31 = arith.addf %30, %29 : vector<8x32xf32>
    %32 = math.log %31 : vector<8x32xf32>
    %33 = arith.addf %25, %32 : vector<8x32xf32>
    %cst_19 = arith.constant 0.000000e+00 : f32
    %34 = vector.broadcast %cst_19 : f32 to vector<8x32xf32>
    %35 = arith.subf %34, %33 : vector<8x32xf32>
    %c0_20 = arith.constant 0 : index
    %c0_21 = arith.constant 0 : index
    %36 = vector.load %arg17[%c0_20, %c0_21] : memref<8x32xf32, #tpu.memory_space<vmem>>, vector<8x32xf32>
    tpu.vector_store %arg17[%c0_20, %c0_21], %35 {strides = array<i32>} : memref<8x32xf32, #tpu.memory_space<vmem>>, vector<8x32xf32>,
    %cst_22 = arith.constant 0.000000e+00 : f32
    %37 = vector.broadcast %cst_22 : f32 to vector<8x32xf32>
    %38 = arith.subf %37, %23 : vector<8x32xf32>
    %cst_23 = arith.constant 0.000000e+00 : f32
    %39 = vector.broadcast %cst_23 : f32 to vector<8x32xf32>
    %40 = arith.maximumf %38, %39 : vector<8x32xf32>
    %41 = math.absf %38 : vector<8x32xf32>
    %cst_24 = arith.constant 0.000000e+00 : f32
    %42 = vector.broadcast %cst_24 : f32 to vector<8x32xf32>
    %43 = arith.subf %42, %41 : vector<8x32xf32>
    %44 = math.exp %43 : vector<8x32xf32>
    %cst_25 = arith.constant 1.000000e+00 : f32
    %45 = vector.broadcast %cst_25 : f32 to vector<8x32xf32>
    %46 = arith.addf %45, %44 : vector<8x32xf32>
    %47 = math.log %46 : vector<8x32xf32>
    %48 = arith.addf %40, %47 : vector<8x32xf32>
    %cst_26 = arith.constant 0.000000e+00 : f32
    %49 = vector.broadcast %cst_26 : f32 to vector<8x32xf32>
    %50 = arith.subf %49, %48 : vector<8x32xf32>
    %cst_27 = arith.constant 0.000000e+00 : f32
    %51 = vector.broadcast %cst_27 : f32 to vector<8x32xf32>
    %52 = arith.cmpf oge, %22, %51 : vector<8x32xf32>
    %cst_28 = arith.constant 0.000000e+00 : f32
    %53 = vector.broadcast %cst_28 : f32 to vector<8x32xf32>
    %54 = arith.maximumf %22, %53 : vector<8x32xf32>
    %cst_29 = arith.constant 5.000000e-01 : f32
    %55 = vector.broadcast %cst_29 : f32 to vector<8x32xf32>
    %56 = arith.addf %54, %55 : vector<8x32xf32>
    %57 = math.log %56 : vector<8x32xf32>
    %cst_30 = arith.constant 0.000000e+00 : f32
    %58 = vector.broadcast %cst_30 : f32 to vector<8x32xf32>
    %59 = arith.subf %58, %22 : vector<8x32xf32>
    %cst_31 = arith.constant 0.000000e+00 : f32
    %60 = vector.broadcast %cst_31 : f32 to vector<8x32xf32>
    %61 = arith.maximumf %59, %60 : vector<8x32xf32>
    %62 = math.absf %59 : vector<8x32xf32>
    %cst_32 = arith.constant 0.000000e+00 : f32
    %63 = vector.broadcast %cst_32 : f32 to vector<8x32xf32>
    %64 = arith.subf %63, %62 : vector<8x32xf32>
    %65 = math.exp %64 : vector<8x32xf32>
    %cst_33 = arith.constant 1.000000e+00 : f32
    %66 = vector.broadcast %cst_33 : f32 to vector<8x32xf32>
    %67 = arith.addf %66, %65 : vector<8x32xf32>
    %68 = math.log %67 : vector<8x32xf32>
    %69 = arith.addf %61, %68 : vector<8x32xf32>
    %cst_34 = arith.constant 0.000000e+00 : f32
    %70 = vector.broadcast %cst_34 : f32 to vector<8x32xf32>
    %71 = arith.subf %70, %69 : vector<8x32xf32>
    %72 = arith.select %52, %57, %71 : vector<8x32xi1>, vector<8x32xf32>
    %73 = arith.addf %50, %72 : vector<8x32xf32>
    %c0_35 = arith.constant 0 : index
    %c0_36 = arith.constant 0 : index
    %74 = vector.load %arg18[%c0_35, %c0_36] : memref<8x32xf32, #tpu.memory_space<vmem>>, vector<8x32xf32>
    tpu.vector_store %arg18[%c0_35, %c0_36], %73 {strides = array<i32>} : memref<8x32xf32, #tpu.memory_space<vmem>>, vector<8x32xf32>,
    %cst_37 = arith.constant 0.000000e+00 : f32
    %75 = vector.broadcast %cst_37 : f32 to vector<1x32xf32>
    %c0_i32 = arith.constant 0 : i32
    %c8_i32 = arith.constant 8 : i32
    %76 = arith.muli %c0_i32, %c8_i32 : i32
    %77 = tpu.assume_multiple %76, 8 : i32
    %78 = arith.index_cast %77 : i32 to index
    %c0_38 = arith.constant 0 : index
    %79 = vector.load %arg17[%78, %c0_38] : memref<8x32xf32, #tpu.memory_space<vmem>>, vector<8x32xf32>
    %80 = arith.index_cast %77 : i32 to index
    %c0_39 = arith.constant 0 : index
    %81 = vector.load %arg18[%80, %c0_39] : memref<8x32xf32, #tpu.memory_space<vmem>>, vector<8x32xf32>
    %cst_40 = arith.constant dense<0.000000e+00> : vector<8x32xf32>
    %82 = tpu.matmul %2, %79, %cst_40 {dimension_numbers = #tpu.dot_dimension_numbers<[1], [0], [0], [1], [0, 0, 1, 1], [], []>} : vector<8x8xf32>, vector<8x32xf32>, vector<8x32xf32> -> vector<8x32xf32>
    %83 = arith.subf %81, %82 : vector<8x32xf32>
    %cst_41 = arith.constant dense<0xFF800000> : vector<32xf32>
    %84 = vector.multi_reduction <maximumf>, %83, %cst_41 [0] : vector<8x32xf32> to vector<32xf32>
    %85 = vector.shape_cast %84 : vector<32xf32> to vector<1x32xf32>
    %86 = vector.broadcast %85 : vector<1x32xf32> to vector<8x32xf32>
    %87 = arith.subf %83, %86 : vector<8x32xf32>
    %88 = math.exp %87 : vector<8x32xf32>
    %cst_42 = arith.constant dense<0.000000e+00> : vector<8x32xf32>
    %89 = tpu.matmul %2, %88, %cst_42 {dimension_numbers = #tpu.dot_dimension_numbers<[1], [0], [0], [1], [0, 0, 1, 1], [], []>} : vector<8x8xf32>, vector<8x32xf32>, vector<8x32xf32> -> vector<8x32xf32>
    %90 = math.exp %82 : vector<8x32xf32>
    %91 = vector.broadcast %75 : vector<1x32xf32> to vector<8x32xf32>
    %92 = arith.mulf %90, %91 : vector<8x32xf32>
    %93 = vector.broadcast %85 : vector<1x32xf32> to vector<8x32xf32>
    %94 = arith.addf %82, %93 : vector<8x32xf32>
    %95 = math.log %89 : vector<8x32xf32>
    %96 = arith.addf %94, %95 : vector<8x32xf32>
    %97 = math.exp %96 : vector<8x32xf32>
    %98 = arith.addf %92, %97 : vector<8x32xf32>
    %99 = arith.index_cast %77 : i32 to index
    %c0_43 = arith.constant 0 : index
    %100 = vector.load %arg19[%99, %c0_43] : memref<8x32xf32, #tpu.memory_space<vmem>>, vector<8x32xf32>
    tpu.vector_store %arg19[%99, %c0_43], %98 {strides = array<i32>} : memref<8x32xf32, #tpu.memory_space<vmem>>, vector<8x32xf32>,
    %101 = vector.extract_strided_slice %98 {offsets = [7, 0], sizes = [1, 32], strides = [1, 1]} : vector<8x32xf32> to vector<1x32xf32>
    %c1_i32 = arith.constant 1 : i32
    %c0_44 = arith.constant 0 : index
    %c0_45 = arith.constant 0 : index
    %102 = vector.load %arg19[%c0_44, %c0_45] : memref<8x32xf32, #tpu.memory_space<vmem>>, vector<8x32xf32>
    %103 = arith.truncf %102 : vector<8x32xf32> to vector<8x32xbf16>
    %c0_46 = arith.constant 0 : index
    %c0_47 = arith.constant 0 : index
    %104 = vector.load %arg6[%c0_46, %c0_47] : memref<32x32xbf16, #tpu.memory_space<vmem>>, vector<32x32xbf16>
    %cst_48 = arith.constant dense<0.000000e+00> : vector<8x32xf32>
    %105 = tpu.matmul %103, %104, %cst_48 {dimension_numbers = #tpu.dot_dimension_numbers<[1], [0], [0], [1], [0, 0, 1, 1], [], []>} : vector<8x32xbf16>, vector<32x32xbf16>, vector<8x32xf32> -> vector<8x32xf32>
    %106 = vector.extract_strided_slice %21 {offsets = [0, 0], sizes = [8, 32], strides = [1, 1]} : vector<8x96xf32> to vector<8x32xf32>
    %107 = vector.extract_strided_slice %106 {offsets = [0, 0], sizes = [8, 16], strides = [1, 1]} : vector<8x32xf32> to vector<8x16xf32>
    %108 = vector.extract_strided_slice %106 {offsets = [0, 16], sizes = [8, 16], strides = [1, 1]} : vector<8x32xf32> to vector<8x16xf32>
    %109 = vector.shape_cast %107 : vector<8x16xf32> to vector<1x8x16xf32>
    %110 = vector.shape_cast %108 : vector<8x16xf32> to vector<1x8x16xf32>
    %111 = tpu.concatenate %109, %110 in 0 : vector<1x8x16xf32>, vector<1x8x16xf32> -> vector<2x8x16xf32>
    %cst_49 = arith.constant 2.500000e-01 : f32
    %112 = vector.broadcast %cst_49 : f32 to vector<2x8x16xf32>
    %113 = arith.mulf %111, %112 : vector<2x8x16xf32>
    %114 = arith.truncf %113 : vector<2x8x16xf32> to vector<2x8x16xbf16>
    %115 = vector.extract_strided_slice %21 {offsets = [0, 32], sizes = [8, 32], strides = [1, 1]} : vector<8x96xf32> to vector<8x32xf32>
    %116 = vector.extract_strided_slice %115 {offsets = [0, 0], sizes = [8, 16], strides = [1, 1]} : vector<8x32xf32> to vector<8x16xf32>
    %117 = vector.extract_strided_slice %115 {offsets = [0, 16], sizes = [8, 16], strides = [1, 1]} : vector<8x32xf32> to vector<8x16xf32>
    %118 = vector.shape_cast %116 : vector<8x16xf32> to vector<1x8x16xf32>
    %119 = vector.shape_cast %117 : vector<8x16xf32> to vector<1x8x16xf32>
    %120 = tpu.concatenate %118, %119 in 0 : vector<1x8x16xf32>, vector<1x8x16xf32> -> vector<2x8x16xf32>
    %121 = arith.truncf %120 : vector<2x8x16xf32> to vector<2x8x16xbf16>
    %c0_50 = arith.constant 0 : index
    %c0_51 = arith.constant 0 : index
    %c0_52 = arith.constant 0 : index
    %122 = vector.load %arg20[%c0_50, %c0_51, %c0_52] : memref<2x8x16xbf16, #tpu.memory_space<vmem>>, vector<2x8x16xbf16>
    tpu.vector_store %arg20[%c0_50, %c0_51, %c0_52], %121 {strides = array<i32>} : memref<2x8x16xbf16, #tpu.memory_space<vmem>>, vector<2x8x16xbf16>,
    %123 = vector.extract_strided_slice %21 {offsets = [0, 64], sizes = [8, 32], strides = [1, 1]} : vector<8x96xf32> to vector<8x32xf32>
    %124 = vector.extract_strided_slice %123 {offsets = [0, 0], sizes = [8, 16], strides = [1, 1]} : vector<8x32xf32> to vector<8x16xf32>
    %125 = vector.extract_strided_slice %123 {offsets = [0, 16], sizes = [8, 16], strides = [1, 1]} : vector<8x32xf32> to vector<8x16xf32>
    %126 = vector.shape_cast %124 : vector<8x16xf32> to vector<1x8x16xf32>
    %127 = vector.shape_cast %125 : vector<8x16xf32> to vector<1x8x16xf32>
    %128 = tpu.concatenate %126, %127 in 0 : vector<1x8x16xf32>, vector<1x8x16xf32> -> vector<2x8x16xf32>
    %129 = arith.truncf %128 : vector<2x8x16xf32> to vector<2x8x16xbf16>
    %c0_53 = arith.constant 0 : index
    %c0_54 = arith.constant 0 : index
    %c0_55 = arith.constant 0 : index
    %130 = vector.load %arg21[%c0_53, %c0_54, %c0_55] : memref<2x8x16xbf16, #tpu.memory_space<vmem>>, vector<2x8x16xbf16>
    tpu.vector_store %arg21[%c0_53, %c0_54, %c0_55], %129 {strides = array<i32>} : memref<2x8x16xbf16, #tpu.memory_space<vmem>>, vector<2x8x16xbf16>,
    %cst_56 = arith.constant 0xFF800000 : f32
    %131 = vector.broadcast %cst_56 : f32 to vector<2x8x1xf32>
    %cst_57 = arith.constant 0.000000e+00 : f32
    %132 = vector.broadcast %cst_57 : f32 to vector<2x8x1xf32>
    %cst_58 = arith.constant 0.000000e+00 : f32
    %133 = vector.broadcast %cst_58 : f32 to vector<2x8x16xf32>
    %c0_i32_59 = arith.constant 0 : i32
    %c8_i32_60 = arith.constant 8 : i32
    %134 = arith.muli %c0_i32_59, %c8_i32_60 : i32
    %135 = tpu.assume_multiple %134, 8 : i32
    %c0_61 = arith.constant 0 : index
    %136 = arith.index_cast %135 : i32 to index
    %c0_62 = arith.constant 0 : index
    %137 = vector.load %arg20[%c0_61, %136, %c0_62] : memref<2x8x16xbf16, #tpu.memory_space<vmem>>, vector<2x8x16xbf16>
    %c0_63 = arith.constant 0 : index
    %138 = arith.index_cast %135 : i32 to index
    %c0_64 = arith.constant 0 : index
    %139 = vector.load %arg21[%c0_63, %138, %c0_64] : memref<2x8x16xbf16, #tpu.memory_space<vmem>>, vector<2x8x16xbf16>
    "tpu.trace_start"() <{level = 10 : i32, message = "hnd,hkd->hnk"}> : () -> ()
    %cst_65 = arith.constant dense<0.000000e+00> : vector<2x8x8xf32>
    %140 = tpu.matmul %114, %137, %cst_65 {dimension_numbers = #tpu.dot_dimension_numbers<[2], [2], [1], [1], [0, 0, 0, 1, 1, 1], [0], [0]>} : vector<2x8x16xbf16>, vector<2x8x16xbf16>, vector<2x8x8xf32> -> vector<2x8x8xf32>
    "tpu.trace_stop"() : () -> ()
    %cst_66 = arith.constant dense<0xFF800000> : vector<2x8xf32>
    %141 = vector.multi_reduction <maximumf>, %140, %cst_66 [2] : vector<2x8x8xf32> to vector<2x8xf32>
    %142 = vector.shape_cast %141 : vector<2x8xf32> to vector<2x8x1xf32>
    %143 = arith.maximumf %131, %142 : vector<2x8x1xf32>
    %144 = arith.subf %131, %143 : vector<2x8x1xf32>
    %145 = math.exp %144 : vector<2x8x1xf32>
    %146 = vector.broadcast %143 : vector<2x8x1xf32> to vector<2x8x8xf32>
    %147 = arith.subf %140, %146 : vector<2x8x8xf32>
    %148 = math.exp %147 : vector<2x8x8xf32>
    %149 = arith.mulf %145, %132 : vector<2x8x1xf32>
    %cst_67 = arith.constant dense<0.000000e+00> : vector<2x8xf32>
    %150 = vector.multi_reduction <add>, %148, %cst_67 [2] : vector<2x8x8xf32> to vector<2x8xf32>
    %151 = vector.shape_cast %150 : vector<2x8xf32> to vector<2x8x1xf32>
    %152 = arith.addf %149, %151 : vector<2x8x1xf32>
    %153 = arith.truncf %148 : vector<2x8x8xf32> to vector<2x8x8xbf16>
    "tpu.trace_start"() <{level = 10 : i32, message = "hnk,hkd->hnd"}> : () -> ()
    %cst_68 = arith.constant dense<0.000000e+00> : vector<2x8x16xf32>
    %154 = tpu.matmul %153, %139, %cst_68 {dimension_numbers = #tpu.dot_dimension_numbers<[2], [1], [1], [2], [0, 0, 0, 1, 1, 2], [0], [0]>} : vector<2x8x8xbf16>, vector<2x8x16xbf16>, vector<2x8x16xf32> -> vector<2x8x16xf32>
    "tpu.trace_stop"() : () -> ()
    %155 = vector.broadcast %145 : vector<2x8x1xf32> to vector<2x8x16xf32>
    %156 = arith.mulf %155, %133 : vector<2x8x16xf32>
    %157 = arith.addf %156, %154 : vector<2x8x16xf32>
    %c1_i32_69 = arith.constant 1 : i32
    %158 = tpu.reciprocal %152 {approx = true} : vector<2x8x1xf32> -> vector<2x8x1xf32>
    %159 = vector.broadcast %158 : vector<2x8x1xf32> to vector<2x8x16xf32>
    %160 = arith.mulf %157, %159 : vector<2x8x16xf32>
    %161 = vector.extract_strided_slice %160 {offsets = [0, 0, 0], sizes = [1, 8, 16], strides = [1, 1, 1]} : vector<2x8x16xf32> to vector<1x8x16xf32>
    %162 = vector.shape_cast %161 : vector<1x8x16xf32> to vector<8x16xf32>
    %163 = vector.extract_strided_slice %160 {offsets = [1, 0, 0], sizes = [1, 8, 16], strides = [1, 1, 1]} : vector<2x8x16xf32> to vector<1x8x16xf32>
    %164 = vector.shape_cast %163 : vector<1x8x16xf32> to vector<8x16xf32>
    %165 = tpu.concatenate %162, %164 in 1 : vector<8x16xf32>, vector<8x16xf32> -> vector<8x32xf32>
    %c0_70 = arith.constant 0 : index
    %c0_71 = arith.constant 0 : index
    %166 = vector.load %arg8[%c0_70, %c0_71] : memref<1x32xf32, #tpu.memory_space<vmem>>, vector<1x32xf32>
    %167 = arith.mulf %105, %105 : vector<8x32xf32>
    %cst_72 = arith.constant dense<0.000000e+00> : vector<8x2xf32>
    %168 = tpu.matmul %167, %3, %cst_72 {dimension_numbers = #tpu.dot_dimension_numbers<[1], [1], [0], [0], [0, 0, 1, 0], [], []>} : vector<8x32xf32>, vector<2x32xf32>, vector<8x2xf32> -> vector<8x2xf32>
    %cst_73 = arith.constant 1.000000e-24 : f32
    %169 = vector.broadcast %cst_73 : f32 to vector<8x2xf32>
    %170 = arith.maximumf %168, %169 : vector<8x2xf32>
    %171 = math.rsqrt %170 : vector<8x2xf32>
    %cst_74 = arith.constant 4.000000e+00 : f32
    %172 = vector.broadcast %cst_74 : f32 to vector<8x2xf32>
    %173 = arith.mulf %171, %172 : vector<8x2xf32>
    %cst_75 = arith.constant dense<0.000000e+00> : vector<8x32xf32>
    %174 = tpu.matmul %173, %3, %cst_75 {dimension_numbers = #tpu.dot_dimension_numbers<[1], [0], [0], [1], [0, 0, 1, 1], [], []>} : vector<8x2xf32>, vector<2x32xf32>, vector<8x32xf32> -> vector<8x32xf32>
    %175 = arith.mulf %105, %174 : vector<8x32xf32>
    %176 = vector.broadcast %166 : vector<1x32xf32> to vector<8x32xf32>
    %177 = arith.mulf %175, %176 : vector<8x32xf32>
    %cst_76 = arith.constant 5.000000e-01 : f32
    %178 = vector.broadcast %cst_76 : f32 to vector<8x32xf32>
    %179 = arith.mulf %178, %177 : vector<8x32xf32>
    %c0_77 = arith.constant 0 : index
    %c0_78 = arith.constant 0 : index
    %180 = vector.load %arg9[%c0_77, %c0_78] : memref<1x32xf32, #tpu.memory_space<vmem>>, vector<1x32xf32>
    %181 = arith.mulf %165, %165 : vector<8x32xf32>
    %cst_79 = arith.constant dense<0.000000e+00> : vector<8x2xf32>
    %182 = tpu.matmul %181, %3, %cst_79 {dimension_numbers = #tpu.dot_dimension_numbers<[1], [1], [0], [0], [0, 0, 1, 0], [], []>} : vector<8x32xf32>, vector<2x32xf32>, vector<8x2xf32> -> vector<8x2xf32>
    %cst_80 = arith.constant 1.000000e-24 : f32
    %183 = vector.broadcast %cst_80 : f32 to vector<8x2xf32>
    %184 = arith.maximumf %182, %183 : vector<8x2xf32>
    %185 = math.rsqrt %184 : vector<8x2xf32>
    %cst_81 = arith.constant 4.000000e+00 : f32
    %186 = vector.broadcast %cst_81 : f32 to vector<8x2xf32>
    %187 = arith.mulf %185, %186 : vector<8x2xf32>
    %cst_82 = arith.constant dense<0.000000e+00> : vector<8x32xf32>
    %188 = tpu.matmul %187, %3, %cst_82 {dimension_numbers = #tpu.dot_dimension_numbers<[1], [0], [0], [1], [0, 0, 1, 1], [], []>} : vector<8x2xf32>, vector<2x32xf32>, vector<8x32xf32> -> vector<8x32xf32>
    %189 = arith.mulf %165, %188 : vector<8x32xf32>
    %190 = vector.broadcast %180 : vector<1x32xf32> to vector<8x32xf32>
    %191 = arith.mulf %189, %190 : vector<8x32xf32>
    %cst_83 = arith.constant 5.000000e-01 : f32
    %192 = vector.broadcast %cst_83 : f32 to vector<8x32xf32>
    %193 = arith.mulf %192, %191 : vector<8x32xf32>
    %194 = arith.addf %179, %193 : vector<8x32xf32>
    %195 = arith.truncf %194 : vector<8x32xf32> to vector<8x32xbf16>
    %c0_84 = arith.constant 0 : index
    %c0_85 = arith.constant 0 : index
    %196 = vector.load %arg10[%c0_84, %c0_85] : memref<32x32xbf16, #tpu.memory_space<vmem>>, vector<32x32xbf16>
    %cst_86 = arith.constant dense<0.000000e+00> : vector<8x32xf32>
    %197 = tpu.matmul %195, %196, %cst_86 {dimension_numbers = #tpu.dot_dimension_numbers<[1], [0], [0], [1], [0, 0, 1, 1], [], []>} : vector<8x32xbf16>, vector<32x32xbf16>, vector<8x32xf32> -> vector<8x32xf32>
    %198 = arith.addf %1, %197 : vector<8x32xf32>
    %c0_87 = arith.constant 0 : index
    %c0_88 = arith.constant 0 : index
    %199 = vector.load %arg11[%c0_87, %c0_88] : memref<1x32xf32, #tpu.memory_space<vmem>>, vector<1x32xf32>
    %200 = arith.mulf %198, %198 : vector<8x32xf32>
    %cst_89 = arith.constant dense<0.000000e+00> : vector<8xf32>
    %201 = vector.multi_reduction <add>, %200, %cst_89 [1] : vector<8x32xf32> to vector<8xf32>
    %202 = vector.shape_cast %201 : vector<8xf32> to vector<8x1xf32>
    %cst_90 = arith.constant 1.000000e-24 : f32
    %203 = vector.broadcast %cst_90 : f32 to vector<8x1xf32>
    %204 = arith.maximumf %202, %203 : vector<8x1xf32>
    %205 = math.rsqrt %204 : vector<8x1xf32>
    %cst_91 = arith.constant 5.65685415 : f32
    %206 = vector.broadcast %cst_91 : f32 to vector<8x1xf32>
    %207 = arith.mulf %205, %206 : vector<8x1xf32>
    %208 = vector.broadcast %207 : vector<8x1xf32> to vector<8x32xf32>
    %209 = arith.mulf %198, %208 : vector<8x32xf32>
    %210 = vector.broadcast %199 : vector<1x32xf32> to vector<8x32xf32>
    %211 = arith.mulf %209, %210 : vector<8x32xf32>
    %212 = arith.truncf %211 : vector<8x32xf32> to vector<8x32xbf16>
    %c0_92 = arith.constant 0 : index
    %c0_93 = arith.constant 0 : index
    %213 = vector.load %arg12[%c0_92, %c0_93] : memref<32x128xbf16, #tpu.memory_space<vmem>>, vector<32x128xbf16>
    %cst_94 = arith.constant dense<0.000000e+00> : vector<8x128xf32>
    %214 = tpu.matmul %212, %213, %cst_94 {dimension_numbers = #tpu.dot_dimension_numbers<[1], [0], [0], [1], [0, 0, 1, 1], [], []>} : vector<8x32xbf16>, vector<32x128xbf16>, vector<8x128xf32> -> vector<8x128xf32>
    %c0_95 = arith.constant 0 : index
    %c0_96 = arith.constant 0 : index
    %215 = vector.load %arg13[%c0_95, %c0_96] : memref<1x128xf32, #tpu.memory_space<vmem>>, vector<1x128xf32>
    %216 = vector.broadcast %215 : vector<1x128xf32> to vector<8x128xf32>
    %217 = arith.addf %214, %216 : vector<8x128xf32>
    %218 = arith.mulf %217, %217 : vector<8x128xf32>
    %219 = arith.mulf %217, %218 : vector<8x128xf32>
    %cst_97 = arith.constant 4.471500e-02 : f32
    %220 = vector.broadcast %cst_97 : f32 to vector<8x128xf32>
    %221 = arith.mulf %220, %219 : vector<8x128xf32>
    %222 = arith.addf %217, %221 : vector<8x128xf32>
    %cst_98 = arith.constant 0.797884583 : f32
    %223 = vector.broadcast %cst_98 : f32 to vector<8x128xf32>
    %224 = arith.mulf %223, %222 : vector<8x128xf32>
    %225 = math.tanh %224 : vector<8x128xf32>
    %cst_99 = arith.constant 1.000000e+00 : f32
    %226 = vector.broadcast %cst_99 : f32 to vector<8x128xf32>
    %227 = arith.addf %226, %225 : vector<8x128xf32>
    %cst_100 = arith.constant 5.000000e-01 : f32
    %228 = vector.broadcast %cst_100 : f32 to vector<8x128xf32>
    %229 = arith.mulf %228, %227 : vector<8x128xf32>
    %230 = arith.mulf %217, %229 : vector<8x128xf32>
    %231 = arith.truncf %230 : vector<8x128xf32> to vector<8x128xbf16>
    %c0_101 = arith.constant 0 : index
    %c0_102 = arith.constant 0 : index
    %232 = vector.load %arg14[%c0_101, %c0_102] : memref<128x32xbf16, #tpu.memory_space<vmem>>, vector<128x32xbf16>
    %cst_103 = arith.constant dense<0.000000e+00> : vector<8x32xf32>
    %233 = tpu.matmul %231, %232, %cst_103 {dimension_numbers = #tpu.dot_dimension_numbers<[1], [0], [0], [1], [0, 0, 1, 1], [], []>} : vector<8x128xbf16>, vector<128x32xbf16>, vector<8x32xf32> -> vector<8x32xf32>
    %c0_104 = arith.constant 0 : index
    %c0_105 = arith.constant 0 : index
    %234 = vector.load %arg15[%c0_104, %c0_105] : memref<1x32xf32, #tpu.memory_space<vmem>>, vector<1x32xf32>
    %235 = vector.broadcast %234 : vector<1x32xf32> to vector<8x32xf32>
    %236 = arith.addf %233, %235 : vector<8x32xf32>
    %237 = arith.addf %198, %236 : vector<8x32xf32>
    %c0_106 = arith.constant 0 : index
    %c0_107 = arith.constant 0 : index
    %c0_108 = arith.constant 0 : index
    %238 = vector.load %arg16[%c0_106, %c0_107, %c0_108] : memref<1x8x32xf32, #tpu.memory_space<vmem>>, vector<1x8x32xf32>
    %239 = vector.shape_cast %238 : vector<1x8x32xf32> to vector<8x32xf32>
    %240 = vector.shape_cast %237 : vector<8x32xf32> to vector<1x8x32xf32>
    tpu.vector_store %arg16[%c0_106, %c0_107, %c0_108], %240 {strides = array<i32>} : memref<1x8x32xf32, #tpu.memory_space<vmem>>, vector<1x8x32xf32>,
    return
  }
  func.func @transform_0(%arg0: i32) -> (i32, i32, i32) {
    %c0_i32 = arith.constant 0 : i32
    %c0_i32_0 = arith.constant 0 : i32
    %c0_i32_1 = arith.constant 0 : i32
    return %arg0, %c0_i32, %c0_i32_0 : i32, i32, i32
  }
  func.func @transform_1(%arg0: i32) -> (i32, i32) {
    %c0_i32 = arith.constant 0 : i32
    %c0_i32_0 = arith.constant 0 : i32
    %c0_i32_1 = arith.constant 0 : i32
    return %c0_i32, %c0_i32_0 : i32, i32
  }
  func.func @transform_2(%arg0: i32) -> (i32, i32) {
    %c0_i32 = arith.constant 0 : i32
    %c0_i32_0 = arith.constant 0 : i32
    %c0_i32_1 = arith.constant 0 : i32
    return %c0_i32, %c0_i32_0 : i32, i32
  }
  func.func @transform_3(%arg0: i32) -> (i32, i32) {
    %c0_i32 = arith.constant 0 : i32
    %c0_i32_0 = arith.constant 0 : i32
    %c0_i32_1 = arith.constant 0 : i32
    return %c0_i32, %c0_i32_0 : i32, i32
  }
  func.func @transform_4(%arg0: i32) -> (i32, i32) {
    %c0_i32 = arith.constant 0 : i32
    %c0_i32_0 = arith.constant 0 : i32
    %c0_i32_1 = arith.constant 0 : i32
    return %c0_i32, %c0_i32_0 : i32, i32
  }
  func.func @transform_5(%arg0: i32) -> (i32, i32) {
    %c0_i32 = arith.constant 0 : i32
    %c0_i32_0 = arith.constant 0 : i32
    %c0_i32_1 = arith.constant 0 : i32
    return %c0_i32, %c0_i32_0 : i32, i32
  }
  func.func @transform_6(%arg0: i32) -> (i32, i32) {
    %c0_i32 = arith.constant 0 : i32
    %c0_i32_0 = arith.constant 0 : i32
    %c0_i32_1 = arith.constant 0 : i32
    return %c0_i32, %c0_i32_0 : i32, i32
  }
  func.func @transform_7(%arg0: i32) -> (i32, i32) {
    %c0_i32 = arith.constant 0 : i32
    %c0_i32_0 = arith.constant 0 : i32
    %c0_i32_1 = arith.constant 0 : i32
    return %c0_i32, %c0_i32_0 : i32, i32
  }
  func.func @transform_8(%arg0: i32) -> (i32, i32) {
    %c0_i32 = arith.constant 0 : i32
    %c0_i32_0 = arith.constant 0 : i32
    %c0_i32_1 = arith.constant 0 : i32
    return %c0_i32, %c0_i32_0 : i32, i32
  }
  func.func @transform_9(%arg0: i32) -> (i32, i32) {
    %c0_i32 = arith.constant 0 : i32
    %c0_i32_0 = arith.constant 0 : i32
    %c0_i32_1 = arith.constant 0 : i32
    return %c0_i32, %c0_i32_0 : i32, i32
  }
  func.func @transform_10(%arg0: i32) -> (i32, i32) {
    %c0_i32 = arith.constant 0 : i32
    %c0_i32_0 = arith.constant 0 : i32
    %c0_i32_1 = arith.constant 0 : i32
    return %c0_i32, %c0_i32_0 : i32, i32
  }
  func.func @transform_11(%arg0: i32) -> (i32, i32) {
    %c0_i32 = arith.constant 0 : i32
    %c0_i32_0 = arith.constant 0 : i32
    %c0_i32_1 = arith.constant 0 : i32
    return %c0_i32, %c0_i32_0 : i32, i32
  }
  func.func @transform_12(%arg0: i32) -> (i32, i32) {
    %c0_i32 = arith.constant 0 : i32
    %c0_i32_0 = arith.constant 0 : i32
    %c0_i32_1 = arith.constant 0 : i32
    return %c0_i32, %c0_i32_0 : i32, i32
  }
  func.func @transform_13(%arg0: i32) -> (i32, i32) {
    %c0_i32 = arith.constant 0 : i32
    %c0_i32_0 = arith.constant 0 : i32
    %c0_i32_1 = arith.constant 0 : i32
    return %c0_i32, %c0_i32_0 : i32, i32
  }
  func.func @transform_14(%arg0: i32) -> (i32, i32) {
    %c0_i32 = arith.constant 0 : i32
    %c0_i32_0 = arith.constant 0 : i32
    %c0_i32_1 = arith.constant 0 : i32
    return %c0_i32, %c0_i32_0 : i32, i32
  }
  func.func @transform_15(%arg0: i32) -> (i32, i32, i32) {
    %c0_i32 = arith.constant 0 : i32
    %c0_i32_0 = arith.constant 0 : i32
    %c0_i32_1 = arith.constant 0 : i32
    return %arg0, %c0_i32, %c0_i32_0 : i32, i32, i32
  }
}

module attributes {stable_mosaic.version = 11 : i64} {
  func.func @final_norm_kernel(%arg0: i32, %arg1: memref<1x8x32xf32, #tpu.memory_space<vmem>>, %arg2: memref<1x32xf32, #tpu.memory_space<vmem>>, %arg3: memref<1x8x32xf32, #tpu.memory_space<vmem>>) attributes {dimension_semantics = [#tpu.dimension_semantics<parallel>], iteration_bounds = array<i64: 2>, scalar_prefetch = 0 : i64, scratch_operands = 0 : i64, tpu.core_type = #tpu.core_type<tc>, window_params = [{transform_indices = @transform_0, window_bounds = array<i64: 1, 8, 32>}, {pipeline_mode = #tpu.pipeline_mode<synchronous>, transform_indices = @transform_1, window_bounds = array<i64: 1, 32>}, {transform_indices = @transform_2, window_bounds = array<i64: 1, 8, 32>}]} {
    %c0 = arith.constant 0 : index
    %c0_0 = arith.constant 0 : index
    %c0_1 = arith.constant 0 : index
    %0 = vector.load %arg1[%c0, %c0_0, %c0_1] : memref<1x8x32xf32, #tpu.memory_space<vmem>>, vector<1x8x32xf32>
    %1 = vector.shape_cast %0 : vector<1x8x32xf32> to vector<8x32xf32>
    %c0_2 = arith.constant 0 : index
    %c0_3 = arith.constant 0 : index
    %2 = vector.load %arg2[%c0_2, %c0_3] : memref<1x32xf32, #tpu.memory_space<vmem>>, vector<1x32xf32>
    %3 = arith.mulf %1, %1 : vector<8x32xf32>
    %cst = arith.constant dense<0.000000e+00> : vector<8xf32>
    %4 = vector.multi_reduction <add>, %3, %cst [1] : vector<8x32xf32> to vector<8xf32>
    %5 = vector.shape_cast %4 : vector<8xf32> to vector<8x1xf32>
    %cst_4 = arith.constant 1.000000e-24 : f32
    %6 = vector.broadcast %cst_4 : f32 to vector<8x1xf32>
    %7 = arith.maximumf %5, %6 : vector<8x1xf32>
    %8 = math.rsqrt %7 : vector<8x1xf32>
    %cst_5 = arith.constant 5.65685415 : f32
    %9 = vector.broadcast %cst_5 : f32 to vector<8x1xf32>
    %10 = arith.mulf %8, %9 : vector<8x1xf32>
    %11 = vector.broadcast %10 : vector<8x1xf32> to vector<8x32xf32>
    %12 = arith.mulf %1, %11 : vector<8x32xf32>
    %13 = vector.broadcast %2 : vector<1x32xf32> to vector<8x32xf32>
    %14 = arith.mulf %12, %13 : vector<8x32xf32>
    %c0_6 = arith.constant 0 : index
    %c0_7 = arith.constant 0 : index
    %c0_8 = arith.constant 0 : index
    %15 = vector.load %arg3[%c0_6, %c0_7, %c0_8] : memref<1x8x32xf32, #tpu.memory_space<vmem>>, vector<1x8x32xf32>
    %16 = vector.shape_cast %15 : vector<1x8x32xf32> to vector<8x32xf32>
    %17 = vector.shape_cast %14 : vector<8x32xf32> to vector<1x8x32xf32>
    tpu.vector_store %arg3[%c0_6, %c0_7, %c0_8], %17 {strides = array<i32>} : memref<1x8x32xf32, #tpu.memory_space<vmem>>, vector<1x8x32xf32>,
    return
  }
  func.func @transform_0(%arg0: i32) -> (i32, i32, i32) {
    %c0_i32 = arith.constant 0 : i32
    %c0_i32_0 = arith.constant 0 : i32
    %c0_i32_1 = arith.constant 0 : i32
    return %arg0, %c0_i32, %c0_i32_0 : i32, i32, i32
  }
  func.func @transform_1(%arg0: i32) -> (i32, i32) {
    %c0_i32 = arith.constant 0 : i32
    %c0_i32_0 = arith.constant 0 : i32
    %c0_i32_1 = arith.constant 0 : i32
    return %c0_i32, %c0_i32_0 : i32, i32
  }
  func.func @transform_2(%arg0: i32) -> (i32, i32, i32) {
    %c0_i32 = arith.constant 0 : i32
    %c0_i32_0 = arith.constant 0 : i32
    %c0_i32_1 = arith.constant 0 : i32
    return %arg0, %c0_i32, %c0_i32_0 : i32, i32, i32
  }
}

</mosaic_0001>

<bundles_post_ra>
// kernel: hybrid_wrapper_forward.5
= control target key start
LH: loop header
LB: loop body
LE: loop exit
PB: predicated region body
PF: predicated region fallthrough
CT: control target
= control target key end

     0   :  { %7 = vsyncpa [#allocation3], 0  ;;  %s710_s0 = inlined_call_operand.hbm [shape: f32[2,8,32], index: 0, kind: input, shape index: {}]   ;;  %s711_s1 = inlined_call_operand.hbm [shape: f32[1,32], index: 1, kind: input, shape index: {}]   ;;  %s712_s2 = inlined_call_operand.hbm [shape: f32[2,8,32], index: 2, kind: output, shape index: {}]  }
   0x1   :  { %9 = vsyncpa [#allocation3 + $0x1], 0 }
   0x2   :  { %10 = vsyncpa [#allocation6], 0 }
   0x3   :  { %11 = vsyncpa [#allocation4], 0 }
   0x4   :  { %13 = vsyncpa [#allocation4 + $0x1], 0  ;;  %s507_s9 = smov 0   ;;  %s509_s10 = smov 0  }
   0x5   :  { %s511_s11 = smov 0   ;;  %s513_s12 = smov 0  }
   0x6 LB: > { %s528_s13 = sadd.s32 4294967295, %s487_s12   ;;  %s285_s14 = sadd.s32 4294967294, %s487_s12   ;;  %s487_s12 = sphi %s513_s12, %s736_s12   ;;  %s483_s11 = sphi %s511_s11, %s735_s11   ;;  %s479_s10 = sphi %s509_s10, %s734_s10   ;;  %s475_s9 = sphi %s507_s9, %s733_s9  }
   0x7   : > { %p39_p0 = scmp.ne.s32.totalorder %s479_s10, %s475_s9  ;;  %p713_p1 = scmp.eq.s32.totalorder %s528_s13, 0 }
   0x8   : > { %p90_p3 = scmp.eq.s32.totalorder %s285_s14, 1  ;;  %p286_p5 = scmp.ge.s32.totalorder %s487_s12, 1 }
   0x9   : > { %p537_p4 = por %p713_p1, %p39_p0  ;;  %p97_p7 = scmp.lt.s32.totalorder %s487_s12, 3 }
   0xa   : > { %p542_p6 = por %p90_p3, %p39_p0  ;;  %s489_s18 = smov [#allocation5]  }
   0xb   : > { %s716_s15 = scalar_select %p537_p4, 1, 0 }
   0xc   : > { %s717_s16 = scalar_select %p542_p6, 1, 0 }
   0xd   : > { %p547_p8 = pnand %p286_p5, %p97_p7  ;;  %s110_s19 = sshll.u32 %s489_s18, 4  ;;  %s111_s19 = int_to_ptr.vmem [resolvable:$true] %s110_s19 }
   0xe   : > { %s555_s20 = sadd.s32 1, %s487_s12   ;;  %s26_s24 = sadd.s32 1, %s483_s11 }
   0xf   : > { %s718_s17 = scalar_select %p547_p8, 1, 0 }
  0x10   : > { %p308_p10 = pneg %p547_p8  ;;  %s23_s22 = ssub.s32 %s487_s12, %s555_s20 }
  0x11   : > { %p565_p12 = scmp.eq.s32.totalorder %s23_s22, 0  ;;  %s359_s27 = scalar_lea.hbm %s711_s1, 16 }
  0x12   : > { %p559_p11 = pnand %p308_p10, %p713_p1  ;;  %p360_p0 = scmp.ne.s32.totalorder %s711_s1, %s359_s27 }
  0x13   : > { %s720_s23 = scalar_select %p565_p12, 1, 0 }
  0x14   : > { %p361_p3 = pneg %p559_p11  ;;  %p366_p10 = scmp.lt.u32.totalorder %s359_s27, %s711_s1 }
  0x16   : > { %p362_p5 = pnand %p361_p3, %p360_p0 }
  0x18   : > { %p363_p7 = pneg %p362_p5 }
  0x1a   : > { %p368_p9 = pnand %p366_p10, %p363_p7 }
  0x1c   : > { %371 = shalt.err (!%p368_p9)
}
  0x1d   : > { %s372_s4 = scalar_lea.vmem %s111_s19, 16  ;;  %s379_s5 = scalar_lea.vmem %s111_s19, 32 }
  0x1e   : > { %p373_p1 = scmp.ne.s32.totalorder %s111_s19, %s372_s4  ;;  %p380_p6 = scmp.lt.s32.totalorder %s111_s19, %s111_s19 }
  0x1f   : > { %p381_p4 = scmp.lt.s32.totalorder %s379_s5, %s372_s4 }
  0x20   : > { %p375_p2 = pnand %p373_p1, %p361_p3 }
  0x21   : > { %p382_p8 = por %p381_p4, %p380_p6 }
  0x22   : > { %p376_p13 = pneg %p375_p2 }
  0x24   : > { %p383_p12 = pnand %p382_p8, %p376_p13 }
  0x26   : > { %386 = shalt.err (!%p383_p12)
}
  0x27   : > { %311 = dma.hbm_to_vmem [thread:$0]  (!%p559_p11), %s711_s1, 16, %s111_s19, [#allocation6]  }
  0x28   : > { %p721_p1 = scmp.ne.s32.totalorder %s720_s23, 0  ;;  %p34_p2 = scmp.eq.s32.totalorder %s487_s12, 0 }
  0x29   : > { %p722_p4 = scmp.ne.s32.totalorder %s483_s11, %s479_s10  ;;  %p723_p6 = scmp.eq.s32.totalorder %s528_s13, 1 }
  0x2a   : > { %s591_s8 = scalar_select %p721_p1, %s483_s11, %s26_s24  }
  0x2b   : > { %p599_p8 = por %p723_p6, %p722_p4  ;;  %p321_p9 = scmp.lt.s32.totalorder %s487_s12, 2 }
  0x2c   : > { %s121_s18 = sand.u32 1, %s483_s11   ;;  %p725_p12 = pmov %p722_p4 }
  0x2d   : > { %s289_s21 = sshll.u32 %s121_s18, 3  ;;  %s290_s22 = sshll.u32 %s487_s12, 7 }
  0x2e   : > { %p35_p13 = por %p34_p2, %p725_p12  ;;  %s612_s19 = scalar_lea.hbm %s710_s0, %s290_s22 }
  0x2f   : > { %s125_s23 = scalar_lea.vmem [#allocation2], %s289_s21  ;;  %s122_s28 = scalar_lea.sflag [#allocation3], %s121_s18 }
  0x30   : > { %s132_s24 = sshll.u32 %s125_s23, 4  ;;  %p614_p11 = pnand %p321_p9, %p35_p13  ;;  %s618_s24 = int_to_ptr.vmem [resolvable:$true] %s132_s24 }
  0x31   : > { %s387_s29 = scalar_lea.hbm %s612_s19, 128  ;;  %s392_s4 = scalar_lea.hbm %s710_s0, 256 }
  0x32   : > { %p388_p0 = scmp.ne.s32.totalorder %s612_s19, %s387_s29  ;;  %p389_p3 = pneg %p614_p11 }
  0x33   : > { %p393_p10 = scmp.lt.u32.totalorder %s612_s19, %s710_s0  ;;  %p394_p1 = scmp.lt.u32.totalorder %s392_s4, %s387_s29 }
  0x34   : > { %p390_p5 = pnand %p389_p3, %p388_p0  ;;  %p396_p4 = scmp.lt.u32.totalorder %s387_s29, %s612_s19 }
  0x35   : > { %p395_p2 = por %p394_p1, %p393_p10 }
  0x36   : > { %p391_p7 = pneg %p390_p5 }
  0x37   : > { %p397_p6 = por %p396_p4, %p395_p2 }
  0x39   : > { %p398_p9 = pnand %p397_p6, %p391_p7 }
  0x3b   : > { %401 = shalt.err (!%p398_p9)
}
  0x3c   : > { %s402_s7 = scalar_lea.vmem %s618_s24, 128  ;;  %s490_s18 = smov [#allocation2]  }
  0x3d   : > { %p403_p12 = scmp.ne.s32.totalorder %s618_s24, %s402_s7  ;;  %s407_s21 = sshll.u32 %s490_s18, 4  ;;  %s408_s21 = int_to_ptr.vmem [resolvable:$false] %s407_s21 }
  0x3e   : > { %s409_s22 = scalar_lea.vmem %s408_s21, 256  ;;  %p410_p5 = scmp.lt.s32.totalorder %s618_s24, %s408_s21 }
  0x3f   : > { %p405_p13 = pnand %p403_p12, %p389_p3  ;;  %p411_p10 = scmp.lt.s32.totalorder %s409_s22, %s402_s7 }
  0x41   : > { %p406_p0 = pneg %p405_p13  ;;  %p412_p1 = por %p411_p10, %p410_p5 }
  0x43   : > { %p413_p2 = pnand %p412_p1, %p406_p0 }
  0x45   : > { %416 = shalt.err (!%p413_p2)
}
  0x46   : > { %315 = dma.hbm_to_vmem [thread:$0]  (!%p614_p11), %s612_s19, 128, %s618_s24, %s122_s28  }
  0x47   : > { %p727_p7 = scmp.ne.s32.totalorder %s718_s17, 0 }
  0x48   : > { %s648_s25 = sand.u32 (!%p727_p7), 1, %s479_s10   ;;  %p728_p3 = scmp.ne.s32.totalorder (!%p727_p7), %s716_s15, 0 }
  0x49   : > { %141 = sbr.rel (%p727_p7) target bundleno = 263 (0x107), region = 28  ;;  %s292_s26 = sshll.u32 (!%p727_p7), %s648_s25, 3 }
  0x4a   : > { %s144_s23 = scalar_lea.sflag (!%p727_p7), [#allocation3], %s648_s25  ;;  %s147_s29 = scalar_lea.vmem (!%p727_p7), [#allocation2], %s292_s26 }
  0x50   : > { %462 = dma.done.wait (%p728_p3), %s144_s23, 128  }
  0x51   : > { %464 = vsyncadd (%p728_p3), %s144_s23, 4294967168  ;;  %p729_p4 = scmp.eq.s32.totalorder %s528_s13, 0 }
  0x53   : > { %466 = dma.done.wait (%p729_p4), [#allocation6], 16   ;;  %p730_p11 = pmov %p729_p4 }
  0x54   : > { %v172_v0 = vld [vmem:[%s147_s29] sm:$0xff]  ;;  %vm175_vm0 = vcmask 261120   ;;  %v295_v7 = vld [vmem:[#allocation5] ss:$0 sm:$0xff]  ;;  %s297_s15 = sshll.u32 %s528_s13, 7  ;;  %s171_s17 = scalar_lea.vmem [#allocation7], %s292_s26 }
  0x55   : > { %468 = vsyncadd (%p730_p11), [#allocation6], 4294967280  ;;  %v174_v1 = vmul.f32 %v172_v0, %v172_v0  ;;  %s205_s19 = sshll.u32 %s171_s17, 4  ;;  %s665_s28 = scalar_lea.hbm %s712_s2, %s297_s15  ;;  %s667_s19 = int_to_ptr.vmem [resolvable:$true] %s205_s19 }
  0x56   : > { %s192_s30 = scalar_lea.sflag [#allocation4], %s648_s25  ;;  %s417_s3 = scalar_lea.vmem %s667_s19, 128 }
  0x57   : > { %v176_v2 = vsel %vm175_vm0, %v174_v1, 0.0  ;;  %p418_p6 = scmp.ne.s32.totalorder %s667_s19, %s417_s3  ;;  %s491_s13 = smov [#allocation7]  }
  0x58   : > { %177 = vadd.xlane.f32.xlu0 %v176_v2  ;;  %s421_s4 = sshll.u32 %s491_s13, 4  ;;  %s422_s4 = int_to_ptr.vmem [resolvable:$false] %s421_s4 }
  0x59   : > { %p419_p9 = pnand %p418_p6, %p599_p8  ;;  %s423_s5 = scalar_lea.vmem %s422_s4, 256 }
  0x5a   : > { %p424_p13 = scmp.lt.s32.totalorder %s667_s19, %s422_s4  ;;  %p425_p0 = scmp.lt.s32.totalorder %s423_s5, %s417_s3 }
  0x5b   : > { %p420_p12 = pneg %p419_p9 }
  0x5c   : > { %p426_p5 = por %p425_p0, %p424_p13 }
  0x5e   : > { %p427_p10 = pnand %p426_p5, %p420_p12 }
  0xe5   : > { %v178_v3 = vpop.xlane.xlu0 %177 }
  0xe6   : > { %v179_v4 = vmax.f32 %v178_v3, 1e-24 }
  0xe8   : > { %357 = vrsqrt.f32 %v179_v4 }
  0xf2   : > { %v358_v5 = vpop.eup %357 }
  0xf3   : > { %v181_v6 = vmul.f32 5.656854, %v358_v5 }
  0xf5   : > { %v182_v8 = vmul.f32 %v181_v6, %v172_v0 }
  0xf7   : > { %v189_v9 = vmul.f32 %v295_v7, %v182_v8 }
  0xf9   : > { %190 = vst.msk [vmem:[%s171_s17] sm:$0xff] %vm175_vm0, %v189_v9 }
  0xfa   : > { %430 = shalt.err (!%p427_p10)
}
  0xfb   : > { %s431_s6 = scalar_lea.hbm %s665_s28, 128  ;;  %s435_s21 = scalar_lea.hbm %s712_s2, 256 }
  0xfc   : > { %p432_p1 = scmp.ne.s32.totalorder %s665_s28, %s431_s6  ;;  %p436_p3 = scmp.lt.u32.totalorder %s665_s28, %s712_s2 }
  0xfd   : > { %p437_p4 = scmp.lt.u32.totalorder %s435_s21, %s431_s6  ;;  %p439_p6 = scmp.lt.u32.totalorder %s431_s6, %s665_s28 }
  0xfe   : > { %p433_p2 = pnand %p432_p1, %p599_p8 }
  0xff   : > { %p438_p11 = por %p437_p4, %p436_p3 }
 0x100   : > { %p434_p7 = pneg %p433_p2 }
 0x101   : > { %p440_p9 = por %p439_p6, %p438_p11 }
 0x103   : > { %p441_p12 = pnand %p440_p9, %p434_p7 }
 0x105   : > { %444 = shalt.err (!%p441_p12)
}
 0x106   : > { %306 = dma.vmem_to_hbm [thread:$0]  (%p599_p8), %s667_s19, 128, %s665_s28, %s192_s30  }
 0x107 PF: > { %s217_s26 = sand.u32 1, %s475_s9   ;;  %p731_p13 = scmp.ne.s32.totalorder %s717_s16, 0 }
 0x108   : > { %p732_p0 = scmp.ge.s32.totalorder %s487_s12, 2  ;;  %s218_s23 = scalar_lea.sflag [#allocation4], %s217_s26 }
 0x10a   : > { %p317_p5 = pnand %p732_p0, %p731_p13 }
 0x10c   : > { %470 = dma.done.wait (!%p317_p5), %s218_s23, 128  }
 0x10d   : > { %472 = vsyncadd (!%p317_p5), %s218_s23, 4294967168  ;;  %p16_p10 = scmp.ge.s32.totalorder %s555_s20, 4   ;;  %s733_s9 = smov %s479_s10 }
 0x10e   : > { %s734_s10 = smov %s483_s11  ;;  %s735_s11 = smov %s591_s8 }
 0x10f   : > { %s736_s12 = smov %s555_s20  ;;  %18 = sbr.rel (!%p16_p10) target bundleno = 6 (0x6), region = 77 }
 0x116   :  { %223 = vsyncpa [#allocation3], 1 }
 0x117   :  { %225 = vsyncpa [#allocation3 + $0x1], 1 }
 0x118   :  { %226 = vsyncpa [#allocation6], 1 }
 0x119   :  { %227 = vsyncpa [#allocation4], 1 }
 0x11a   :  { %229 = vsyncpa [#allocation4 + $0x1], 1 }

// kernel: hybrid_wrapper_forward.3
= control target key start
LH: loop header
LB: loop body
LE: loop exit
PB: predicated region body
PF: predicated region fallthrough
CT: control target
= control target key end

     0   :  { %s3935_s0 = inlined_call_operand.hbm [shape: f32[2,8,32], index: 0, kind: input, shape index: {}]   ;;  %s3936_s1 = inlined_call_operand.hbm [shape: f32[8,8], index: 1, kind: input, shape index: {}]   ;;  %s3937_s2 = inlined_call_operand.hbm [shape: f32[2,32], index: 2, kind: input, shape index: {}]   ;;  %s3938_s3 = inlined_call_operand.hbm [shape: f32[1,32], index: 3, kind: input, shape index: {}]   ;;  %s3939_s4 = inlined_call_operand.hbm [shape: bf16[32,64], index: 4, kind: input, shape index: {}]   ;;  %s3940_s5 = inlined_call_operand.hbm [shape: bf16[32,32], index: 5, kind: input, shape index: {}]   ;;  %s3941_s6 = inlined_call_operand.hbm [shape: bf16[32,96], index: 6, kind: input, shape index: {}]   ;;  %s3942_s7 = inlined_call_operand.hbm [shape: f32[1,32], index: 7, kind: input, shape index: {}]   ;;  %s3943_s8 = inlined_call_operand.hbm [shape: f32[1,32], index: 8, kind: input, shape index: {}]   ;;  %s3944_s9 = inlined_call_operand.hbm [shape: bf16[32,32], index: 9, kind: input, shape index: {}]   ;;  %s3945_s10 = inlined_call_operand.hbm [shape: f32[1,32], index: 10, kind: input, shape index: {}]   ;;  %s3946_s11 = inlined_call_operand.hbm [shape: bf16[32,128], index: 11, kind: input, shape index: {}]   ;;  %s3947_s12 = inlined_call_operand.hbm [shape: f32[1,128], index: 12, kind: input, shape index: {}]   ;;  %s3948_s13 = inlined_call_operand.hbm [shape: bf16[128,32], index: 13, kind: input, shape index: {}]   ;;  %s3949_s14 = inlined_call_operand.hbm [shape: f32[1,32], index: 14, kind: input, shape index: {}]   ;;  %s3950_s15 = inlined_call_operand.hbm [shape: f32[2,8,32], index: 15, kind: output, shape index: {}]  }
   0x1   :  { %3962 = sst [smem:[#allocation46_spill]] %s3935_s0 }
   0x2   :  { %3963 = sst [smem:[#allocation47_spill]] %s3936_s1 }
   0x3   :  { %3964 = sst [smem:[#allocation48_spill]] %s3938_s3 }
   0x4   :  { %3965 = sst [smem:[#allocation49_spill]] %s3950_s15 }
   0x5   :  { %20 = vsyncpa [#allocation8], 0 }
   0x6   :  { %22 = vsyncpa [#allocation8 + $0x1], 0 }
   0x7   :  { %23 = vsyncpa [#allocation11], 0 }
   0x8   :  { %24 = vsyncpa [#allocation14], 0 }
   0x9   :  { %25 = vsyncpa [#allocation17], 0 }
   0xa   :  { %26 = vsyncpa [#allocation20], 0 }
   0xb   :  { %27 = vsyncpa [#allocation23], 0 }
   0xc   :  { %28 = vsyncpa [#allocation26], 0 }
   0xd   :  { %29 = vsyncpa [#allocation29], 0 }
   0xe   :  { %30 = vsyncpa [#allocation9], 0 }
   0xf   :  { %32 = vsyncpa [#allocation9 + $0x1], 0  ;;  %s3302_s18 = smov 0   ;;  %s3304_s19 = smov 0  }
  0x10   :  { %s3306_s20 = smov 0   ;;  %s3308_s21 = smov 0  }
  0x11 LB: > { %3966 = sst [smem:[#allocation41_spill]] %s3183_s18  ;;  %s3197_s22 = smov [#allocation10]   ;;  %s3195_s21 = sphi %s3308_s21, %s4013_s21   ;;  %s3191_s20 = sphi %s3306_s20, %s4012_s20   ;;  %s3187_s19 = sphi %s3304_s19, %s4011_s19   ;;  %s3183_s18 = sphi %s3302_s18, %s4010_s18  }
  0x12   : > { %3967 = sst [smem:[#allocation42_spill]] %s3187_s19  ;;  %s402_s23 = sshll.u32 %s3197_s22, 4  ;;  %s403_s23 = int_to_ptr.vmem [resolvable:$true] %s402_s23 }
  0x13   : > { %3968 = sst [smem:[#allocation43_spill]] %s3191_s20  ;;  %s3323_s24 = sadd.s32 4294967295, %s3195_s21  }
  0x14   : > { %3969 = sst [smem:[#allocation44_spill]] %s3323_s24  ;;  %p2181_p0 = scmp.ge.s32.totalorder %s3195_s21, 1 }
  0x15   : > { %p3954_p1 = scmp.eq.s32.totalorder %s3323_s24, 0  ;;  %p389_p2 = scmp.lt.s32.totalorder %s3195_s21, 3 }
  0x16   : > { %s3198_s26 = smov [#allocation13]   ;;  %s3199_s29 = smov [#allocation16]  }
  0x17   : > { %p3328_p3 = pnand %p2181_p0, %p389_p2  ;;  %s424_s27 = sshll.u32 %s3198_s26, 4  ;;  %s3335_s27 = int_to_ptr.vmem [resolvable:$true] %s424_s27 }
  0x18   : > { %s447_s30 = sshll.u32 %s3199_s29, 4  ;;  %s3973_s1 = sld [smem:[#allocation47_spill]]  ;;  %s3343_s30 = int_to_ptr.vmem [resolvable:$true] %s447_s30 }
  0x19   : > { %s3970_s25 = scalar_select %p3328_p3, 1, 0 }
  0x1a   : > { %p2485_p5 = pneg %p3328_p3 }
  0x1b   : > { %3971 = sst [smem:[#allocation45_spill]] %s3970_s25 }
  0x1c   : > { %p3339_p6 = pnand %p2485_p5, %p3954_p1 }
  0x1e   : > { %s2679_s22 = scalar_lea.hbm %s3973_s1, 128  ;;  %p3353_p8 = pneg %p3339_p6 }
  0x1f   : > { %p2680_p7 = scmp.ne.s32.totalorder %s3973_s1, %s2679_s22  ;;  %p2686_p11 = scmp.lt.u32.totalorder %s2679_s22, %s3973_s1 }
  0x21   : > { %p2682_p9 = pnand %p3353_p8, %p2680_p7 }
  0x23   : > { %p2683_p10 = pneg %p2682_p9 }
  0x25   : > { %p2688_p12 = pnand %p2686_p11, %p2683_p10 }
  0x27   : > { %2691 = shalt.err (!%p2688_p12)
}
  0x28   : > { %s2692_s16 = scalar_lea.vmem %s403_s23, 128  ;;  %p2700_p5 = scmp.lt.s32.totalorder %s403_s23, %s403_s23 }
  0x29   : > { %p2693_p13 = scmp.ne.s32.totalorder %s403_s23, %s2692_s16  ;;  %p2701_p4 = scmp.lt.s32.totalorder %s2692_s16, %s2692_s16 }
  0x2b   : > { %p2695_p0 = pnand %p2693_p13, %p3353_p8  ;;  %p2702_p1 = por %p2701_p4, %p2700_p5 }
  0x2d   : > { %p2696_p2 = pneg %p2695_p0 }
  0x2f   : > { %p2703_p3 = pnand %p2702_p1, %p2696_p2 }
  0x31   : > { %2706 = shalt.err (!%p2703_p3)
}
  0x32   : > { %2488 = dma.hbm_to_vmem [thread:$0]  (!%p3339_p6), %s3973_s1, 128, %s403_s23, [#allocation11]  }
  0x33   : > { %s3975_s3 = sld [smem:[#allocation48_spill]] }
  0x39   : > { %s2707_s22 = scalar_lea.hbm %s3975_s3, 16 }
  0x3a   : > { %p2708_p7 = scmp.ne.s32.totalorder %s3975_s3, %s2707_s22  ;;  %p2714_p1 = scmp.lt.u32.totalorder %s2707_s22, %s3975_s3 }
  0x3c   : > { %p2710_p9 = pnand %p2708_p7, %p3353_p8 }
  0x3e   : > { %p2711_p4 = pneg %p2710_p9 }
  0x40   : > { %p2716_p3 = pnand %p2714_p1, %p2711_p4 }
  0x42   : > { %2719 = shalt.err (!%p2716_p3)
}
  0x43   : > { %s2720_s23 = scalar_lea.vmem %s3335_s27, 16  ;;  %s2727_s24 = scalar_lea.vmem %s3335_s27, 32 }
  0x44   : > { %p2721_p10 = scmp.ne.s32.totalorder %s3335_s27, %s2720_s23  ;;  %p2728_p13 = scmp.lt.s32.totalorder %s3335_s27, %s3335_s27 }
  0x45   : > { %p2729_p0 = scmp.lt.s32.totalorder %s2727_s24, %s2720_s23 }
  0x46   : > { %p2723_p11 = pnand %p2721_p10, %p3353_p8 }
  0x47   : > { %p2730_p2 = por %p2729_p0, %p2728_p13 }
  0x48   : > { %p2724_p12 = pneg %p2723_p11 }
  0x4a   : > { %p2731_p5 = pnand %p2730_p2, %p2724_p12 }
  0x4c   : > { %2734 = shalt.err (!%p2731_p5)
}
  0x4d   : > { %2494 = dma.hbm_to_vmem [thread:$0]  (!%p3339_p6), %s3975_s3, 16, %s3335_s27, [#allocation14]  }
  0x4e   : > { %s2735_s17 = scalar_lea.hbm %s3940_s5, 256 }
  0x4f   : > { %p2736_p7 = scmp.ne.s32.totalorder %s3940_s5, %s2735_s17  ;;  %p2742_p1 = scmp.lt.u32.totalorder %s2735_s17, %s3940_s5 }
  0x51   : > { %p2738_p9 = pnand %p2736_p7, %p3353_p8 }
  0x53   : > { %p2739_p4 = pneg %p2738_p9 }
  0x55   : > { %p2744_p3 = pnand %p2742_p1, %p2739_p4 }
  0x57   : > { %2747 = shalt.err (!%p2744_p3)
}
  0x58   : > { %s2748_s27 = scalar_lea.vmem %s3343_s30, 256  ;;  %p2756_p13 = scmp.lt.s32.totalorder %s3343_s30, %s3343_s30 }
  0x59   : > { %p2749_p10 = scmp.ne.s32.totalorder %s3343_s30, %s2748_s27  ;;  %p2757_p0 = scmp.lt.s32.totalorder %s2748_s27, %s2748_s27 }
  0x5b   : > { %p2751_p11 = pnand %p2749_p10, %p3353_p8  ;;  %p2758_p2 = por %p2757_p0, %p2756_p13 }
  0x5d   : > { %p2752_p12 = pneg %p2751_p11 }
  0x5f   : > { %p2759_p5 = pnand %p2758_p2, %p2752_p12 }
  0x61   : > { %2762 = shalt.err (!%p2759_p5)
}
  0x62   : > { %s3200_s24 = smov 64   ;;  %s3201_s18 = smov 4  }
  0x63   : > { %2500 = dma.hbm_to_vmem [thread:$0]  (!%p3339_p6), %s3940_s5, 256, %s3343_s30, [#allocation17], %s3200_s24, %s3200_s24, %s3201_s18  }
  0x64   : > { %s3202_s0 = smov [#allocation19]   ;;  %s3203_s22 = smov [#allocation22]  }
  0x65   : > { %s474_s17 = sshll.u32 %s3202_s0, 4  ;;  %s495_s29 = sshll.u32 %s3203_s22, 4  ;;  %s475_s17 = int_to_ptr.vmem [resolvable:$true] %s474_s17  ;;  %s496_s29 = int_to_ptr.vmem [resolvable:$true] %s495_s29 }
  0x66   : > { %s2763_s27 = scalar_lea.hbm %s3942_s7, 16 }
  0x67   : > { %p2764_p7 = scmp.ne.s32.totalorder %s3942_s7, %s2763_s27  ;;  %p2770_p1 = scmp.lt.u32.totalorder %s2763_s27, %s3942_s7 }
  0x69   : > { %p2766_p9 = pnand %p2764_p7, %p3353_p8 }
  0x6b   : > { %p2767_p4 = pneg %p2766_p9 }
  0x6d   : > { %p2772_p3 = pnand %p2770_p1, %p2767_p4 }
  0x6f   : > { %2775 = shalt.err (!%p2772_p3)
}
  0x70   : > { %s2776_s30 = scalar_lea.vmem %s475_s17, 16  ;;  %s2783_s15 = scalar_lea.vmem %s475_s17, 32 }
  0x71   : > { %p2777_p10 = scmp.ne.s32.totalorder %s475_s17, %s2776_s30  ;;  %p2784_p13 = scmp.lt.s32.totalorder %s475_s17, %s475_s17 }
  0x72   : > { %p2785_p0 = scmp.lt.s32.totalorder %s2783_s15, %s2776_s30 }
  0x73   : > { %p2779_p11 = pnand %p2777_p10, %p3353_p8 }
  0x74   : > { %p2786_p2 = por %p2785_p0, %p2784_p13 }
  0x75   : > { %p2780_p12 = pneg %p2779_p11 }
  0x77   : > { %p2787_p5 = pnand %p2786_p2, %p2780_p12 }
  0x79   : > { %2790 = shalt.err (!%p2787_p5)
}
  0x7a   : > { %2506 = dma.hbm_to_vmem [thread:$0]  (!%p3339_p6), %s3942_s7, 16, %s475_s17, [#allocation20]  }
  0x7b   : > { %s2791_s25 = scalar_lea.hbm %s3944_s9, 256 }
  0x7c   : > { %p2792_p7 = scmp.ne.s32.totalorder %s3944_s9, %s2791_s25  ;;  %p2798_p1 = scmp.lt.u32.totalorder %s2791_s25, %s3944_s9 }
  0x7e   : > { %p2794_p9 = pnand %p2792_p7, %p3353_p8 }
  0x80   : > { %p2795_p4 = pneg %p2794_p9 }
  0x82   : > { %p2800_p3 = pnand %p2798_p1, %p2795_p4 }
  0x84   : > { %2803 = shalt.err (!%p2800_p3)
}
  0x85   : > { %s2804_s27 = scalar_lea.vmem %s496_s29, 256  ;;  %p2812_p13 = scmp.lt.s32.totalorder %s496_s29, %s496_s29 }
  0x86   : > { %p2805_p10 = scmp.ne.s32.totalorder %s496_s29, %s2804_s27  ;;  %p2813_p0 = scmp.lt.s32.totalorder %s2804_s27, %s2804_s27 }
  0x88   : > { %p2807_p11 = pnand %p2805_p10, %p3353_p8  ;;  %p2814_p2 = por %p2813_p0, %p2812_p13 }
  0x8a   : > { %p2808_p12 = pneg %p2807_p11 }
  0x8c   : > { %p2815_p5 = pnand %p2814_p2, %p2808_p12 }
  0x8e   : > { %2818 = shalt.err (!%p2815_p5)
}
  0x8f   : > { %2512 = dma.hbm_to_vmem [thread:$0]  (!%p3339_p6), %s3944_s9, 256, %s496_s29, [#allocation23], %s3200_s24, %s3200_s24, %s3201_s18  }
  0x90   : > { %s3204_s15 = smov [#allocation25]   ;;  %s3205_s3 = smov [#allocation28]  }
  0x91   : > { %s519_s1 = sshll.u32 %s3204_s15, 4  ;;  %s543_s19 = sshll.u32 %s3205_s3, 4  ;;  %s520_s1 = int_to_ptr.vmem [resolvable:$true] %s519_s1  ;;  %s544_s19 = int_to_ptr.vmem [resolvable:$true] %s543_s19 }
  0x92   : > { %s2819_s0 = scalar_lea.hbm %s3946_s11, 256 }
  0x93   : > { %p2820_p7 = scmp.ne.s32.totalorder %s3946_s11, %s2819_s0  ;;  %p2826_p1 = scmp.lt.u32.totalorder %s2819_s0, %s3946_s11 }
  0x95   : > { %p2822_p9 = pnand %p2820_p7, %p3353_p8 }
  0x97   : > { %p2823_p4 = pneg %p2822_p9 }
  0x99   : > { %p2828_p3 = pnand %p2826_p1, %p2823_p4 }
  0x9b   : > { %2831 = shalt.err (!%p2828_p3)
}
  0x9c   : > { %s2832_s29 = scalar_lea.vmem %s520_s1, 256  ;;  %p2840_p13 = scmp.lt.s32.totalorder %s520_s1, %s520_s1 }
  0x9d   : > { %p2833_p10 = scmp.ne.s32.totalorder %s520_s1, %s2832_s29  ;;  %p2841_p0 = scmp.lt.s32.totalorder %s2832_s29, %s2832_s29 }
  0x9f   : > { %p2835_p11 = pnand %p2833_p10, %p3353_p8  ;;  %p2842_p2 = por %p2841_p0, %p2840_p13 }
  0xa1   : > { %p2836_p12 = pneg %p2835_p11 }
  0xa3   : > { %p2843_p5 = pnand %p2842_p2, %p2836_p12 }
  0xa5   : > { %2846 = shalt.err (!%p2843_p5)
}
  0xa6   : > { %2518 = dma.hbm_to_vmem [thread:$0]  (!%p3339_p6), %s3946_s11, 256, %s520_s1, [#allocation26], %s3200_s24, %s3200_s24, %s3201_s18  }
  0xa7   : > { %s2847_s20 = scalar_lea.hbm %s3948_s13, 1024 }
  0xa8   : > { %p2848_p7 = scmp.ne.s32.totalorder %s3948_s13, %s2847_s20  ;;  %p2854_p1 = scmp.lt.u32.totalorder %s2847_s20, %s3948_s13 }
  0xaa   : > { %p2850_p9 = pnand %p2848_p7, %p3353_p8 }
  0xac   : > { %p2851_p4 = pneg %p2850_p9 }
  0xae   : > { %p2856_p3 = pnand %p2854_p1, %p2851_p4 }
  0xb0   : > { %2859 = shalt.err (!%p2856_p3)
}
  0xb1   : > { %s2860_s23 = scalar_lea.vmem %s544_s19, 1024  ;;  %p2868_p13 = scmp.lt.s32.totalorder %s544_s19, %s544_s19 }
  0xb2   : > { %p2861_p10 = scmp.ne.s32.totalorder %s544_s19, %s2860_s23  ;;  %p2869_p0 = scmp.lt.s32.totalorder %s2860_s23, %s2860_s23 }
  0xb4   : > { %p2863_p11 = pnand %p2861_p10, %p3353_p8  ;;  %p2870_p2 = por %p2869_p0, %p2868_p13 }
  0xb6   : > { %p2864_p12 = pneg %p2863_p11 }
  0xb8   : > { %p2871_p5 = pnand %p2870_p2, %p2864_p12 }
  0xba   : > { %2874 = shalt.err (!%p2871_p5)
}
  0xbb   : > { %2524 = dma.hbm_to_vmem [thread:$0]  (!%p3339_p6), %s3948_s13, 1024, %s544_s19, [#allocation29], %s3200_s24, %s3200_s24, %s3201_s18  }
  0xbc   : > { %s3206_s29 = smov [#allocation12]   ;;  %s3207_s30 = smov [#allocation15]  }
  0xbd   : > { %s413_s17 = sshll.u32 %s3206_s29, 4  ;;  %s434_s15 = sshll.u32 %s3207_s30, 4  ;;  %s414_s17 = int_to_ptr.vmem [resolvable:$true] %s413_s17  ;;  %s435_s15 = int_to_ptr.vmem [resolvable:$true] %s434_s15 }
  0xbe   : > { %s2875_s25 = scalar_lea.hbm %s3937_s2, 32 }
  0xbf   : > { %p2876_p7 = scmp.ne.s32.totalorder %s3937_s2, %s2875_s25  ;;  %p2882_p1 = scmp.lt.u32.totalorder %s2875_s25, %s3937_s2 }
  0xc1   : > { %p2878_p9 = pnand %p2876_p7, %p3353_p8 }
  0xc3   : > { %p2879_p4 = pneg %p2878_p9 }
  0xc5   : > { %p2884_p3 = pnand %p2882_p1, %p2879_p4 }
  0xc7   : > { %2887 = shalt.err (!%p2884_p3)
}
  0xc8   : > { %s2888_s19 = scalar_lea.vmem %s414_s17, 32  ;;  %p2896_p13 = scmp.lt.s32.totalorder %s414_s17, %s414_s17 }
  0xc9   : > { %p2889_p10 = scmp.ne.s32.totalorder %s414_s17, %s2888_s19  ;;  %p2897_p0 = scmp.lt.s32.totalorder %s2888_s19, %s2888_s19 }
  0xcb   : > { %p2891_p11 = pnand %p2889_p10, %p3353_p8  ;;  %p2898_p2 = por %p2897_p0, %p2896_p13 }
  0xcd   : > { %p2892_p12 = pneg %p2891_p11 }
  0xcf   : > { %p2899_p5 = pnand %p2898_p2, %p2892_p12 }
  0xd1   : > { %2902 = shalt.err (!%p2899_p5)
}
  0xd2   : > { %2491 = dma.hbm_to_vmem [thread:$0]  (!%p3339_p6), %s3937_s2, 32, %s414_s17, [#allocation11]  }
  0xd3   : > { %s2903_s3 = scalar_lea.hbm %s3939_s4, 256 }
  0xd4   : > { %p2904_p7 = scmp.ne.s32.totalorder %s3939_s4, %s2903_s3  ;;  %p2910_p1 = scmp.lt.u32.totalorder %s2903_s3, %s3939_s4 }
  0xd6   : > { %p2906_p9 = pnand %p2904_p7, %p3353_p8 }
  0xd8   : > { %p2907_p4 = pneg %p2906_p9 }
  0xda   : > { %p2912_p3 = pnand %p2910_p1, %p2907_p4 }
  0xdc   : > { %2915 = shalt.err (!%p2912_p3)
}
  0xdd   : > { %s2916_s16 = scalar_lea.vmem %s435_s15, 256  ;;  %p2924_p13 = scmp.lt.s32.totalorder %s435_s15, %s435_s15 }
  0xde   : > { %p2917_p10 = scmp.ne.s32.totalorder %s435_s15, %s2916_s16  ;;  %p2925_p0 = scmp.lt.s32.totalorder %s2916_s16, %s2916_s16 }
  0xe0   : > { %p2919_p11 = pnand %p2917_p10, %p3353_p8  ;;  %p2926_p2 = por %p2925_p0, %p2924_p13 }
  0xe2   : > { %p2920_p12 = pneg %p2919_p11 }
  0xe4   : > { %p2927_p5 = pnand %p2926_p2, %p2920_p12 }
  0xe6   : > { %2930 = shalt.err (!%p2927_p5)
}
  0xe7   : > { %2497 = dma.hbm_to_vmem [thread:$0]  (!%p3339_p6), %s3939_s4, 256, %s435_s15, [#allocation14], %s3200_s24, %s3200_s24, %s3201_s18  }
  0xe8   : > { %s3208_s19 = smov [#allocation18]   ;;  %s3209_s27 = smov [#allocation21]  }
  0xe9   : > { %s460_s1 = sshll.u32 %s3208_s19, 4  ;;  %s485_s29 = sshll.u32 %s3209_s27, 4  ;;  %s461_s1 = int_to_ptr.vmem [resolvable:$true] %s460_s1  ;;  %s486_s29 = int_to_ptr.vmem [resolvable:$true] %s485_s29 }
  0xea   : > { %s2931_s20 = scalar_lea.hbm %s3941_s6, 256 }
  0xeb   : > { %p2932_p7 = scmp.ne.s32.totalorder %s3941_s6, %s2931_s20  ;;  %p2938_p1 = scmp.lt.u32.totalorder %s2931_s20, %s3941_s6 }
  0xed   : > { %p2934_p9 = pnand %p2932_p7, %p3353_p8 }
  0xef   : > { %p2935_p4 = pneg %p2934_p9 }
  0xf1   : > { %p2940_p3 = pnand %p2938_p1, %p2935_p4 }
  0xf3   : > { %2943 = shalt.err (!%p2940_p3)
}
  0xf4   : > { %s2944_s15 = scalar_lea.vmem %s461_s1, 256  ;;  %p2952_p13 = scmp.lt.s32.totalorder %s461_s1, %s461_s1 }
  0xf5   : > { %p2945_p10 = scmp.ne.s32.totalorder %s461_s1, %s2944_s15  ;;  %p2953_p0 = scmp.lt.s32.totalorder %s2944_s15, %s2944_s15 }
  0xf7   : > { %p2947_p11 = pnand %p2945_p10, %p3353_p8  ;;  %p2954_p2 = por %p2953_p0, %p2952_p13 }
  0xf9   : > { %p2948_p12 = pneg %p2947_p11 }
  0xfb   : > { %p2955_p5 = pnand %p2954_p2, %p2948_p12 }
  0xfd   : > { %2958 = shalt.err (!%p2955_p5)
}
  0xfe   : > { %2503 = dma.hbm_to_vmem [thread:$0]  (!%p3339_p6), %s3941_s6, 256, %s461_s1, [#allocation17], %s3200_s24, %s3200_s24, %s3201_s18  }
  0xff   : > { %s2959_s30 = scalar_lea.hbm %s3943_s8, 16 }
 0x100   : > { %p2960_p7 = scmp.ne.s32.totalorder %s3943_s8, %s2959_s30  ;;  %p2966_p1 = scmp.lt.u32.totalorder %s2959_s30, %s3943_s8 }
 0x102   : > { %p2962_p9 = pnand %p2960_p7, %p3353_p8 }
 0x104   : > { %p2963_p4 = pneg %p2962_p9 }
 0x106   : > { %p2968_p3 = pnand %p2966_p1, %p2963_p4 }
 0x108   : > { %2971 = shalt.err (!%p2968_p3)
}
 0x109   : > { %s2972_s22 = scalar_lea.vmem %s486_s29, 16  ;;  %s2979_s24 = scalar_lea.vmem %s486_s29, 32 }
 0x10a   : > { %p2973_p10 = scmp.ne.s32.totalorder %s486_s29, %s2972_s22  ;;  %p2980_p13 = scmp.lt.s32.totalorder %s486_s29, %s486_s29 }
 0x10b   : > { %p2981_p0 = scmp.lt.s32.totalorder %s2979_s24, %s2972_s22 }
 0x10c   : > { %p2975_p11 = pnand %p2973_p10, %p3353_p8 }
 0x10d   : > { %p2982_p2 = por %p2981_p0, %p2980_p13 }
 0x10e   : > { %p2976_p12 = pneg %p2975_p11 }
 0x110   : > { %p2983_p5 = pnand %p2982_p2, %p2976_p12 }
 0x112   : > { %2986 = shalt.err (!%p2983_p5)
}
 0x113   : > { %2509 = dma.hbm_to_vmem [thread:$0]  (!%p3339_p6), %s3943_s8, 16, %s486_s29, [#allocation20]  }
 0x114   : > { %s3210_s16 = smov [#allocation24]   ;;  %s3211_s17 = smov [#allocation27]  }
 0x115   : > { %s509_s15 = sshll.u32 %s3210_s16, 4  ;;  %s533_s23 = sshll.u32 %s3211_s17, 4  ;;  %s510_s15 = int_to_ptr.vmem [resolvable:$true] %s509_s15  ;;  %s534_s23 = int_to_ptr.vmem [resolvable:$true] %s533_s23 }
 0x116   : > { %s2987_s30 = scalar_lea.hbm %s3945_s10, 16 }
 0x117   : > { %p2988_p7 = scmp.ne.s32.totalorder %s3945_s10, %s2987_s30  ;;  %p2994_p1 = scmp.lt.u32.totalorder %s2987_s30, %s3945_s10 }
 0x119   : > { %p2990_p9 = pnand %p2988_p7, %p3353_p8 }
 0x11b   : > { %p2991_p4 = pneg %p2990_p9 }
 0x11d   : > { %p2996_p3 = pnand %p2994_p1, %p2991_p4 }
 0x11f   : > { %2999 = shalt.err (!%p2996_p3)
}
 0x120   : > { %s3000_s29 = scalar_lea.vmem %s510_s15, 16  ;;  %s3007_s22 = scalar_lea.vmem %s510_s15, 32 }
 0x121   : > { %p3001_p10 = scmp.ne.s32.totalorder %s510_s15, %s3000_s29  ;;  %p3008_p13 = scmp.lt.s32.totalorder %s510_s15, %s510_s15 }
 0x122   : > { %p3009_p0 = scmp.lt.s32.totalorder %s3007_s22, %s3000_s29 }
 0x123   : > { %p3003_p11 = pnand %p3001_p10, %p3353_p8 }
 0x124   : > { %p3010_p2 = por %p3009_p0, %p3008_p13 }
 0x125   : > { %p3004_p12 = pneg %p3003_p11 }
 0x127   : > { %p3011_p5 = pnand %p3010_p2, %p3004_p12 }
 0x129   : > { %3014 = shalt.err (!%p3011_p5)
}
 0x12a   : > { %2515 = dma.hbm_to_vmem [thread:$0]  (!%p3339_p6), %s3945_s10, 16, %s510_s15, [#allocation23]  }
 0x12b   : > { %s3015_s17 = scalar_lea.hbm %s3947_s12, 16 }
 0x12c   : > { %p3016_p7 = scmp.ne.s32.totalorder %s3947_s12, %s3015_s17  ;;  %p3022_p1 = scmp.lt.u32.totalorder %s3015_s17, %s3947_s12 }
 0x12e   : > { %p3018_p9 = pnand %p3016_p7, %p3353_p8 }
 0x130   : > { %p3019_p4 = pneg %p3018_p9 }
 0x132   : > { %p3024_p3 = pnand %p3022_p1, %p3019_p4 }
 0x134   : > { %3027 = shalt.err (!%p3024_p3)
}
 0x135   : > { %s3028_s20 = scalar_lea.vmem %s534_s23, 16  ;;  %s3035_s15 = scalar_lea.vmem %s534_s23, 32 }
 0x136   : > { %p3029_p10 = scmp.ne.s32.totalorder %s534_s23, %s3028_s20  ;;  %p3036_p13 = scmp.lt.s32.totalorder %s534_s23, %s534_s23 }
 0x137   : > { %p3037_p0 = scmp.lt.s32.totalorder %s3035_s15, %s3028_s20 }
 0x138   : > { %p3031_p11 = pnand %p3029_p10, %p3353_p8 }
 0x139   : > { %p3038_p2 = por %p3037_p0, %p3036_p13 }
 0x13a   : > { %p3032_p12 = pneg %p3031_p11 }
 0x13c   : > { %p3039_p5 = pnand %p3038_p2, %p3032_p12 }
 0x13e   : > { %3042 = shalt.err (!%p3039_p5)
}
 0x13f   : > { %2521 = dma.hbm_to_vmem [thread:$0]  (!%p3339_p6), %s3947_s12, 16, %s534_s23, [#allocation26]  }
 0x140   : > { %s3212_s29 = smov [#allocation30]   ;;  %s3043_s1 = scalar_lea.hbm %s3949_s14, 16 }
 0x141   : > { %s557_s22 = sshll.u32 %s3212_s29, 4  ;;  %p3044_p7 = scmp.ne.s32.totalorder %s3949_s14, %s3043_s1  ;;  %s558_s22 = int_to_ptr.vmem [resolvable:$true] %s557_s22 }
 0x142   : > { %p3050_p1 = scmp.lt.u32.totalorder %s3043_s1, %s3949_s14 }
 0x143   : > { %p3046_p9 = pnand %p3044_p7, %p3353_p8 }
 0x145   : > { %p3047_p4 = pneg %p3046_p9 }
 0x147   : > { %p3052_p3 = pnand %p3050_p1, %p3047_p4 }
 0x149   : > { %3055 = shalt.err (!%p3052_p3)
}
 0x14a   : > { %s3056_s23 = scalar_lea.vmem %s558_s22, 16  ;;  %s3063_s30 = scalar_lea.vmem %s558_s22, 32 }
 0x14b   : > { %p3057_p10 = scmp.ne.s32.totalorder %s558_s22, %s3056_s23  ;;  %p3064_p13 = scmp.lt.s32.totalorder %s558_s22, %s558_s22 }
 0x14c   : > { %p3065_p0 = scmp.lt.s32.totalorder %s3063_s30, %s3056_s23 }
 0x14d   : > { %p3059_p11 = pnand %p3057_p10, %p3353_p8 }
 0x14e   : > { %p3066_p2 = por %p3065_p0, %p3064_p13 }
 0x14f   : > { %p3060_p12 = pneg %p3059_p11 }
 0x151   : > { %p3067_p5 = pnand %p3066_p2, %p3060_p12 }
 0x153   : > { %3070 = shalt.err (!%p3067_p5)
}
 0x154   : > { %s3976_s15 = sld [smem:[#allocation43_spill]]  ;;  %s3977_s25 = sld [smem:[#allocation42_spill]] }
 0x155   : > { %s3978_s26 = sld [smem:[#allocation41_spill]]  ;;  %s3979_s0 = sld [smem:[#allocation44_spill]] }
 0x156   : > { %2527 = dma.hbm_to_vmem [thread:$0]  (!%p3339_p6), %s3949_s14, 16, %s558_s22, [#allocation29]  }
 0x157   : > { %s2180_s29 = sadd.s32 4294967294, %s3195_s21   ;;  %s3634_s28 = sadd.s32 1, %s3195_s21  }
 0x158   : > { %s42_s24 = ssub.s32 %s3195_s21, %s3634_s28  ;;  %p53_p9 = scmp.eq.s32.totalorder %s3195_s21, 0 }
 0x159   : > { %p43_p8 = scmp.eq.s32.totalorder %s42_s24, 0  ;;  %p382_p11 = scmp.eq.s32.totalorder %s2180_s29, 1 }
 0x15a   : > { %s45_s18 = sadd.s32 1, %s3976_s15  ;;  %p52_p7 = scmp.ne.s32.totalorder %s3976_s15, %s3977_s25 }
 0x15b   : > { %p58_p4 = scmp.ne.s32.totalorder %s3977_s25, %s3978_s26  ;;  %p3981_p3 = scmp.eq.s32.totalorder %s3979_s0, 0 }
 0x15c   : > { %s3645_s1 = scalar_select %p43_p8, %s3976_s15, %s45_s18  }
 0x15d   : > { %p3647_p1 = por %p53_p9, %p52_p7  ;;  %p3653_p6 = por %p3981_p3, %p58_p4 }
 0x15e   : > { %p376_p10 = scmp.eq.s32.totalorder %s3979_s0, 1  ;;  %p2550_p12 = scmp.lt.s32.totalorder %s3195_s21, 2 }
 0x15f   : > { %s568_s17 = sand.u32 1, %s3976_s15   ;;  %p3664_p0 = por %p382_p11, %p58_p4 }
 0x160   : > { %p3660_p13 = por %p376_p10, %p52_p7  ;;  %s2197_s23 = sshll.u32 %s568_s17, 3 }
 0x161   : > { %s3984_s27 = scalar_select %p3664_p0, 1, 0 }
 0x162   : > { %s3983_s19 = scalar_select %p3660_p13, 1, 0 }
 0x163   : > { %s2198_s30 = sshll.u32 %s3195_s21, 7  ;;  %s3985_s25 = sld [smem:[#allocation46_spill]] }
 0x164   : > { %s572_s15 = scalar_lea.vmem [#allocation7], %s2197_s23  ;;  %p3678_p2 = pnand %p2550_p12, %p3647_p1 }
 0x165   : > { %s579_s0 = sshll.u32 %s572_s15, 4  ;;  %s569_s24 = scalar_lea.sflag [#allocation8], %s568_s17  ;;  %s3674_s0 = int_to_ptr.vmem [resolvable:$true] %s579_s0 }
 0x166   : > { %p3073_p8 = pneg %p3678_p2 }
 0x169   : > { %s3672_s26 = scalar_lea.hbm %s3985_s25, %s2198_s30  ;;  %s3076_s3 = scalar_lea.hbm %s3985_s25, 256 }
 0x16a   : > { %s3071_s18 = scalar_lea.hbm %s3672_s26, 128  ;;  %p3077_p4 = scmp.lt.u32.totalorder %s3672_s26, %s3985_s25 }
 0x16b   : > { %p3072_p5 = scmp.ne.s32.totalorder %s3672_s26, %s3071_s18  ;;  %p3078_p1 = scmp.lt.u32.totalorder %s3076_s3, %s3071_s18 }
 0x16c   : > { %p3080_p10 = scmp.lt.u32.totalorder %s3071_s18, %s3672_s26 }
 0x16d   : > { %p3074_p7 = pnand %p3073_p8, %p3072_p5  ;;  %p3079_p3 = por %p3078_p1, %p3077_p4 }
 0x16f   : > { %p3075_p9 = pneg %p3074_p7  ;;  %p3081_p11 = por %p3080_p10, %p3079_p3 }
 0x171   : > { %p3082_p12 = pnand %p3081_p11, %p3075_p9 }
 0x173   : > { %3085 = shalt.err (!%p3082_p12)
}
 0x174   : > { %s3086_s17 = scalar_lea.vmem %s3674_s0, 128  ;;  %s3213_s15 = smov [#allocation7]  }
 0x175   : > { %p3087_p5 = scmp.ne.s32.totalorder %s3674_s0, %s3086_s17  ;;  %s3091_s23 = sshll.u32 %s3213_s15, 4  ;;  %s3092_s23 = int_to_ptr.vmem [resolvable:$false] %s3091_s23 }
 0x176   : > { %s3093_s30 = scalar_lea.vmem %s3092_s23, 256  ;;  %p3094_p13 = scmp.lt.s32.totalorder %s3674_s0, %s3092_s23 }
 0x177   : > { %p3089_p7 = pnand %p3087_p5, %p3073_p8  ;;  %p3095_p4 = scmp.lt.s32.totalorder %s3093_s30, %s3086_s17 }
 0x179   : > { %p3090_p0 = pneg %p3089_p7  ;;  %p3096_p1 = por %p3095_p4, %p3094_p13 }
 0x17b   : > { %p3097_p3 = pnand %p3096_p1, %p3090_p0 }
 0x17d   : > { %3100 = shalt.err (!%p3097_p3)
}
 0x17e   : > { %2531 = dma.hbm_to_vmem [thread:$0]  (!%p3678_p2), %s3672_s26, 128, %s3674_s0, %s569_s24  }
 0x17f   : > { %s3987_s18 = sld [smem:[#allocation45_spill]] }
 0x185   : > { %p3988_p9 = scmp.ne.s32.totalorder %s3987_s18, 0 }
 0x186   : > { %s3989_s3 = sld [smem:[#allocation42_spill]] (!%p3988_p9) }
 0x187   : > { %588 = sbr.rel (%p3988_p9) target bundleno = 3478 (0xd96), region = 80 }
 0x18c   : > { %s3710_s16 = sand.u32 (!%p3988_p9), 1, %s3989_s3  }
 0x18d   : > { %s2200_s20 = sshll.u32 (!%p3988_p9), %s3710_s16, 3  ;;  %s591_s17 = scalar_lea.sflag (!%p3988_p9), [#allocation8], %s3710_s16 }
 0x18e   : > { %s594_s15 = scalar_lea.vmem [#allocation7], %s2200_s20 }
 0x18f   : > { %3146 = dma.done.wait (%p3653_p6), %s591_s17, 128  }
 0x190   : > { %3148 = vsyncadd (%p3653_p6), %s591_s17, 4294967168  ;;  %s3990_s26 = sld [smem:[#allocation44_spill]] }
 0x196   : > { %p3991_p13 = scmp.eq.s32.totalorder %s3990_s26, 0 }
 0x198   : > { %3150 = dma.done.wait (%p3991_p13), [#allocation11], 160   ;;  %p3992_p0 = pmov %p3991_p13 }
 0x19a   : > { %3152 = vsyncadd (%p3992_p0), [#allocation11], 4294967136  ;;  %p3993_p2 = pmov %p3992_p0 }
 0x19b   : > { %p3994_p8 = pmov %p3992_p0 }
 0x19c   : > { %3154 = dma.done.wait (%p3993_p2), [#allocation14], 272  }
 0x19d   : > { %3156 = vsyncadd (%p3994_p8), [#allocation14], 4294967024  ;;  %p3995_p10 = pmov %p3992_p0 }
 0x19e   : > { %p3996_p11 = pmov %p3992_p0 }
 0x19f   : > { %3158 = dma.done.wait (%p3995_p10), [#allocation17], 512  }
 0x1a0   : > { %3160 = vsyncadd (%p3996_p11), [#allocation17], 4294966784  ;;  %p3997_p6 = pmov %p3992_p0 }
 0x1a1   : > { %p3998_p12 = pmov %p3992_p0 }
 0x1a2   : > { %3162 = dma.done.wait (%p3997_p6), [#allocation20], 32  }
 0x1a3   : > { %3164 = vsyncadd (%p3998_p12), [#allocation20], 4294967264  ;;  %p3999_p5 = pmov %p3992_p0 }
 0x1a4   : > { %p4000_p7 = pmov %p3992_p0 }
 0x1a5   : > { %3166 = dma.done.wait (%p3999_p5), [#allocation23], 272  }
 0x1a6   : > { %3168 = vsyncadd (%p4000_p7), [#allocation23], 4294967024  ;;  %p4001_p4 = pmov %p3992_p0 }
 0x1a7   : > { %p4002_p1 = pmov %p3992_p0 }
 0x1a8   : > { %3170 = dma.done.wait (%p4001_p4), [#allocation26], 272  }
 0x1a9   : > { %3172 = vsyncadd (%p4002_p1), [#allocation26], 4294967024  ;;  %p4003_p3 = pmov %p3992_p0 }
 0x1aa   : > { %p4004_p9 = pmov %p3992_p0 }
 0x1ab   : > { %3174 = dma.done.wait (%p4003_p3), [#allocation29], 1040  }
 0x1ac   : > { %3176 = vsyncadd (%p4004_p9), [#allocation29], 4294966256  ;;  %v3748_v0 = vld [vmem:[%s594_s15] sm:$0xff]  ;;  %vm703_vm0 = vcmask 261120   ;;  %v3214_v4 = vmov 0.0   ;;  %vm3215_vm1 = vmmov 0  }
 0x1ad   : > { %v702_v1 = vmul.f32 %v3748_v0, %v3748_v0  ;;  %v2621_v3 = vld [vmem:[#allocation15] sm:$0xff]   ;;  %2311 = vmatprep.subr.bf16.mxu1 %v3214_v4  ;;  %2327 = vmatprep.subr.mxu0 %v3214_v4  ;;  %v2622_v5 = vld [vmem:[#allocation15 + $0x8] sm:$0xff]   ;;  %v2216_v10 = vld [vmem:[#allocation13] ss:$0 sm:$0xff]  ;;  %s3216_s22 = smov 96   ;;  %s3217_s0 = smov 32  }
 0x1ae   : > { %2312 = vmatpush3.bf16.msra.mxu1 %v2621_v3  ;;  %2315 = vmatprep.mubr.msk.bf16.mxu1 %vm3215_vm1, %v3214_v4  ;;  %v2623_v13 = vld [vmem:[#allocation18] sm:$0xff]   ;;  %v2624_v15 = vld [vmem:[#allocation18 + $0x8] sm:$0xff]   ;;  %v699_v52 = vld [vmem:[#allocation10] sm:$0xff]  ;;  %vm877_vm3 = vcmask 64512   ;;  %s3218_s29 = smov 112   ;;  %s3219_s24 = smov 64  }
 0x1af   : > { %v704_v2 = vsel %vm703_vm0, %v702_v1, 0.0  ;;  %2313 = vmatprep.subr.bf16.mxu1 %v3214_v4  ;;  %2329 = vmatprep.mubr.msk.f32.mxu0 %vm3215_vm1, %v3214_v4  ;;  %vm1126_vm4 = vcmask 125952   ;;  %vm1141_vm5 = vcmask 130048   ;;  %vm1267_vm6 = vcmask 1043456   ;;  %s3220_s23 = smov 16   ;;  %s2262_s30 = sshll.u32 %s3990_s26, 7 }
 0x1b0   : > { %705 = vadd.xlane.f32.xlu0 %v704_v2  ;;  %vm1453_vm7 = vcmask 1041408   ;;  %vm1449_vm8 = vcmask 15360   ;;  %s696_s18 = scalar_lea.vmem [#allocation31], %s2200_s20  ;;  %s1964_s20 = scalar_lea.sflag [#allocation9], %s3710_s16 }
 0x1b1   : > { %s1977_s3 = sshll.u32 %s696_s18, 4  ;;  %p4006_p0 = scmp.ne.s32.totalorder %s3983_s19, 0  ;;  %s3892_s3 = int_to_ptr.vmem [resolvable:$true] %s1977_s3 }
 0x1b2   : > { %2314 = vmatpush3.bf16.msra.mxu1 %v2622_v5  ;;  %s3101_s26 = scalar_lea.vmem %s3892_s3, 128 }
 0x1b3   : > { %2319 = vmatprep.subr.bf16.mxu1 %v3214_v4  ;;  %p3102_p13 = scmp.ne.s32.totalorder %s3892_s3, %s3101_s26 }
 0x1b5   : > { %p3103_p2 = pnand %p3102_p13, %p4006_p0 }
 0x1b7   : > { %p3104_p8 = pneg %p3103_p2 }
 0x23d   : > { %v706_v6 = vpop.xlane.xlu0 %705 }
 0x23e   : > { %v707_v7 = vmax.f32 %v706_v6, 1e-24 }
 0x240   : > { %2639 = vrsqrt.f32 %v707_v7 }
 0x24a   : > { %v2640_v8 = vpop.eup %2639 }
 0x24b   : > { %v709_v9 = vmul.f32 5.656854, %v2640_v8 }
 0x24d   : > { %v710_v11 = vmul.f32 %v709_v9, %v3748_v0 }
 0x24f   : > { %v717_v12 = vmul.f32 %v2216_v10, %v710_v11 }
 0x251   : > { %v718_v14 = vpack.c.bf16 %v717_v12, %v717_v12 }
 0x253   : > { %2316 = vmatmul.mubr.msk.bf16.vlgmr.msra.gmra.mrb[0].mxu1 %vm703_vm0, %v718_v14 }
 0x254   : > { %2320 = vmatpush3.bf16.msra.mxu1 %v2623_v13  ;;  %2323 = vmatprep.mubr.msk.bf16.mxu1 %vm3215_vm1, %v3214_v4 }
 0x255   : > { %2321 = vmatprep.subr.bf16.mxu1 %v3214_v4 }
 0x258   : > { %2322 = vmatpush3.bf16.msra.mxu1 %v2624_v15 }
 0x259   : > { %2332 = vmatprep.subr.mxu1 %v3214_v4 }
 0x25b   : > { %2324 = vmatmul.mubr.msk.bf16.vlgmr.msra.gmra.mrb[4].mxu1 %vm703_vm0, %v718_v14 }
 0x25c   : > { %2334 = vmatprep.mubr.msk.f32.mxu1 %vm3215_vm1, %v3214_v4 }
 0x326   : > { %v772_v16 = vpop.f32.mrb[0].mxu1 }
 0x327   : > { %v835_v17 = vand.u32 2147483647, %v772_v16  ;;  %v849_v18 = vsub.f32 0.0, %v772_v16  ;;  %v2317_v19 = vpop.f32.mrb[1].mxu1  ;;  %v834_v31 = vmax.f32 %v772_v16, 0.0  ;;  %vm860_vm2 = vcmp.ge.f32.partialorder %v772_v16, 0.0 }
 0x328   : > { %v775_v20 = vpop.f32.mrb[2].mxu1  ;;  %v2626_v19 = vld [vmem:[#allocation16 + $0x8] sm:$0xff]  }
 0x329   : > { %v836_v21 = vsub.f32 0.0, %v835_v17  ;;  %v851_v22 = vand.u32 2147483647, %v849_v18  ;;  %v2318_v23 = vpop.f32.mrb[3].mxu1  ;;  %v861_v35 = vadd.f32 0.5, %v834_v31  ;;  %v850_v41 = vmax.f32 %v849_v18, 0.0 }
 0x32a   : > { %v2625_v18 = vld [vmem:[#allocation16] sm:$0xff]  }
 0x32b   : > { %v837_v24 = vmul.f32 1.442695, %v836_v21  ;;  %v852_v25 = vsub.f32 0.0, %v851_v22 }
 0x32d   : > { %2641 = vpow2.f32 %v837_v24  ;;  %v853_v26 = vmul.f32 1.442695, %v852_v25 }
 0x32e   : > { %v3770_v27 = vpop.f32.mrb[4].mxu1 }
 0x32f   : > { %2643 = vpow2.f32 %v853_v26  ;;  %v2325_v28 = vpop.f32.mrb[5].mxu1  ;;  %v3786_v57 = vpack.c.bf16 %v3770_v27, %v3770_v27  ;;  %v1108_v16 = vmul.f32 0.25, %v3770_v27 }
 0x330   : > { %v831_v29 = vpop.f32.mrb[6].mxu1 }
 0x331   : > { %v2326_v30 = vpop.f32.mrb[7].mxu1  ;;  %v1110_v17 = vpack.c.bf16 %v1108_v16, %v1108_v16 }
 0x337   : > { %v2642_v32 = vpop.eup %2641 }
 0x338   : > { %v839_v33 = vadd.f32 1.0, %v2642_v32 }
 0x339   : > { %v2644_v34 = vpop.eup %2643 }
 0x33a   : > { %2645 = vlog2.f32 %v839_v33  ;;  %v855_v36 = vadd.f32 1.0, %v2644_v34 }
 0x33c   : > { %2647 = vlog2.f32 %v855_v36 }
 0x33d   : > { %2649 = vlog2.f32 %v861_v35 }
 0x344   : > { %v2646_v37 = vpop.eup %2645 }
 0x345   : > { %v841_v38 = vmul.f32 0.6931472, %v2646_v37 }
 0x346   : > { %v2648_v39 = vpop.eup %2647 }
 0x347   : > { %v842_v40 = vadd.f32 %v841_v38, %v834_v31  ;;  %v857_v42 = vmul.f32 0.6931472, %v2648_v39  ;;  %v2650_v43 = vpop.eup %2649 }
 0x348   : > { %v863_v47 = vmul.f32 0.6931472, %v2650_v43 }
 0x349   : > { %v843_v44 = vsub.f32 0.0, %v842_v40  ;;  %v858_v45 = vadd.f32 %v857_v42, %v850_v41 }
 0x34b   : > { %845 = vrot.lane.b32.xlu0 %v843_v44, %s3216_s22  ;;  %v859_v46 = vsub.f32 0.0, %v858_v45 }
 0x34d   : > { %v864_v48 = vsel %vm860_vm2, %v863_v47, %v859_v46 }
 0x34e   : > { %866 = vrot.lane.b32.xlu1 %v864_v48, %s3217_s0 }
 0x3bd   : > { %v846_v49 = vpop.permute.xlu0 %845 }
 0x3be   : > { %848 = vst.msk [vmem:[#allocation2] sm:$0xff] %vm703_vm0, %v846_v49 }
 0x3c0   : > { %v867_v50 = vpop.permute.xlu1 %866 }
 0x3c1   : > { %v869_v51 = vadd.f32 %v867_v50, %v859_v46 }
 0x3c3   : > { %871 = vrot.lane.b32.xlu1 %v869_v51, %s3216_s22 }
 0x3c5   : > { %v875_v53 = vld [vmem:[#allocation2] sm:$0xff] }
 0x3c6   : > { %2328 = vmatpush3.msra.mxu0 %v875_v53 }
 0x3c7   : > { %2330 = vmatmul.mubr.msk.f32.vlgmr.msra.gmra.mrb[0].mxu0 %vm877_vm3, %v699_v52  ;;  %1105 = vrot.lane.b32.xlu1 %v3770_v27, %s3218_s29  ;;  %s3221_s29 = smov [#allocation31]  }
 0x3c8   : > { %2337 = vmatprep.subr.bf16.mxu0 %v3214_v4  ;;  %2341 = vmatprep.mubr.msk.bf16.mxu0 %vm3215_vm1, %v3214_v4 }
 0x3c9   : > { %2338 = vmatpush3.bf16.msra.mxu0 %v2625_v18 }
 0x3ca   : > { %2339 = vmatprep.subr.bf16.mxu0 %v3214_v4 }
 0x3cd   : > { %2340 = vmatpush3.bf16.msra.mxu0 %v2626_v19 }
 0x3ce   : > { %2351 = vmatprep.subr.bf16.mxu0 %v3214_v4 }
 0x435   : > { %v872_v54 = vpop.permute.xlu1 %871 }
 0x436   : > { %874 = vst.msk [vmem:[#allocation3] sm:$0xff] %vm703_vm0, %v872_v54 }
 0x439   : > { %v3779_v55 = vpop.permute.xlu1 %1105 }
 0x43a   : > { %v2266_v56 = vpack.c.bf16 %v3779_v55, %v3779_v55  ;;  %v1109_v40 = vmul.f32 0.25, %v3779_v55 }
 0x43c   : > { %1131 = vrot.lane.b32.xlu0 %v2266_v56, %s3219_s24  ;;  %1122 = vrot.lane.b32.xlu1 %v2266_v56, %s3216_s22  ;;  %v1111_v42 = vpack.c.bf16 %v1109_v40, %v1109_v40 }
 0x43d   : > { %v876_v58 = vld [vmem:[#allocation3] sm:$0xff] }
 0x440   : > { %1120 = vrot.lane.b32.xlu1 %v3786_v57, %s3216_s22  ;;  %s4005_s22 = sld [smem:[#allocation49_spill]] }
 0x446   : > { %s3890_s0 = scalar_lea.hbm %s4005_s22, %s2262_s30 }
 0x49a   : > { %v947_v59 = vpop.f32.mrb[0].mxu0 }
 0x49b   : > { %v951_v60 = vsub.f32 %v876_v58, %v947_v59  ;;  %v2331_v61 = vpop.f32.mrb[1].mxu0  ;;  %v1032_v22 = vmul.f32 1.442695, %v947_v59 }
 0x49d   : > { %v952_v62 = vsel %vm703_vm0, %v951_v60, -inf }
 0x49e   : > { %v953_v63 = vrot.slane %v952_v62, 4 }
 0x4a0   : > { %v954_v1 = vmax.f32 %v952_v62, %v953_v63 }
 0x4a2   : > { %v955_v2 = vrot.slane %v954_v1, 2 }
 0x4a4   : > { %v956_v3 = vmax.f32 %v954_v1, %v955_v2 }
 0x4a6   : > { %v957_v5 = vrot.slane %v956_v3, 1 }
 0x4a8   : > { %v958_v6 = vmax.f32 %v956_v3, %v957_v5  ;;  %v700_v5 = vld [vmem:[#allocation12] sm:$0x3] }
 0x4aa   : > { %v959_v7 = vsub.f32 %v951_v60, %v958_v6  ;;  %v1035_v8 = vadd.f32 %v958_v6, %v947_v59 }
 0x4ac   : > { %v960_v9 = vmul.f32 1.442695, %v959_v7 }
 0x4ae   : > { %2651 = vpow2.f32 %v960_v9  ;;  %v1132_v10 = vpop.permute.xlu0 %1131  ;;  %v1123_v11 = vpop.permute.xlu1 %1122 }
 0x4af   : > { %1136 = vst.msk [vmem:[#allocation6 + $0x4] sm:$0xf] %vm1126_vm4, %v1132_v10  ;;  %1128 = vst.msk [vmem:[#allocation5 + $0x4] sm:$0xf] %vm1126_vm4, %v1123_v11 }
 0x4b2   : > { %v1121_v12 = vpop.permute.xlu1 %1120 }
 0x4b3   : > { %1127 = vst.msk [vmem:[#allocation5] sm:$0xf] %vm1126_vm4, %v1121_v12 }
 0x4b6   : > { %v1138_v37 = vld [vmem:[#allocation5 + $0x4] sm:$0xf]  ;;  %v1140_v41 = vld [vmem:[#allocation6 + $0x4] sm:$0xf] }
 0x4b7   : > { %v1192_v39 = vsel %vm1141_vm5, %v1138_v37, 0  ;;  %v1315_v43 = vsel %vm1267_vm6, %v1140_v41, 0 }
 0x4b8   : > { %v2652_v13 = vpop.eup %2651 }
 0x4b9   : > { %2333 = vmatpush3.msra.mxu1 %v2652_v13 }
 0x4ba   : > { %2335 = vmatmul.mubr.msk.f32.vlgmr.msra.gmra.mrb[8].mxu1 %vm877_vm3, %v699_v52  ;;  %2345 = vmatprep.subr.bf16.mxu1 %v3214_v4  ;;  %v1137_v14 = vld [vmem:[#allocation5] sm:$0xf] }
 0x4bb   : > { %2347 = vmatprep.mubr.msk.bf16.mxu1 %vm3215_vm1, %v3214_v4  ;;  %v1146_v15 = vsel %vm1141_vm5, %v1137_v14, 0 }
 0x4c0   : > { %2346 = vmatpush3.bf16.xpose.msra.mxu1 %v1146_v15 }
 0x4c1   : > { %2357 = vmatprep.subr.bf16.mxu1 %v3214_v4 }
 0x4c7   : > { %2348 = vmatmul.mubr.msk.bf16.vlgmr.msra.gmra.mrb[12].mxu1 %vm1141_vm5, %v1110_v17 }
 0x4c8   : > { %2359 = vmatprep.mubr.msk.bf16.mxu1 %vm3215_vm1, %v3214_v4 }
 0x58d   : > { %v1028_v20 = vpop.f32.mrb[8].mxu1 }
 0x58e   : > { %2653 = vlog2.f32 %v1028_v20  ;;  %v2336_v21 = vpop.f32.mrb[9].mxu1 }
 0x58f   : > { %2655 = vpow2.f32 %v1032_v22 }
 0x598   : > { %v2654_v23 = vpop.eup %2653 }
 0x599   : > { %v1037_v24 = vmul.f32 0.6931472, %v2654_v23  ;;  %v2656_v32 = vpop.eup %2655 }
 0x59a   : > { %v1182_v25 = vpop.f32.mrb[12].mxu1  ;;  %v1034_v33 = vmul.f32 0.0, %v2656_v32 }
 0x59b   : > { %v1038_v26 = vadd.f32 %v1037_v24, %v1035_v8  ;;  %v2349_v27 = vpop.f32.mrb[13].mxu1  ;;  %v1234_v28 = vsel %vm877_vm3, %v1182_v25, -inf }
 0x59c   : > { %1235 = vmax.xlane.f32.xlu0 %v1234_v28  ;;  %v1185_v29 = vpop.f32.mrb[14].mxu1 }
 0x59d   : > { %v1039_v30 = vmul.f32 1.442695, %v1038_v26  ;;  %v2350_v31 = vpop.f32.mrb[15].mxu1 }
 0x59f   : > { %2657 = vpow2.f32 %v1039_v30 }
 0x5a9   : > { %v2658_v34 = vpop.eup %2657 }
 0x5aa   : > { %v1041_v35 = vadd.f32 %v2658_v34, %v1034_v33 }
 0x5ac   : > { %1042 = vst.msk [vmem:[#allocation4] sm:$0xff] %vm703_vm0, %v1041_v35 }
 0x5b3   : > { %v1043_v36 = vld [vmem:[#allocation4] sm:$0xff] }
 0x5b4   : > { %v1044_v38 = vpack.c.bf16 %v1043_v36, %v1043_v36 }
 0x5b6   : > { %2342 = vmatmul.mubr.msk.bf16.vlgmr.msra.gmra.mrb[4].mxu0 %vm703_vm0, %v1044_v38 }
 0x5b7   : > { %2352 = vmatpush3.bf16.xpose.msra.mxu0 %v1192_v39  ;;  %2353 = vmatprep.mubr.msk.bf16.mxu0 %vm3215_vm1, %v3214_v4 }
 0x5b8   : > { %2363 = vmatprep.subr.bf16.mxu0 %v3214_v4 }
 0x5be   : > { %2354 = vmatmul.mubr.msk.bf16.vlgmr.msra.gmra.mrb[8].mxu0 %vm1141_vm5, %v1111_v42 }
 0x5bf   : > { %2364 = vmatpush3.bf16.msra.mxu0 %v1315_v43  ;;  %2365 = vmatprep.mubr.msk.bf16.mxu0 %vm3215_vm1, %v3214_v4 }
 0x5c0   : > { %2389 = vmatprep.subr.bf16.mxu0 %v3214_v4 }
 0x629   : > { %v3823_v53 = vpop.xlane.xlu0 %1235 }
 0x62a   : > { %v1246_v54 = vsub.f32 %v1182_v25, %v3823_v53  ;;  %v1240_v30 = vsub.f32 -inf, %v3823_v53  ;;  %v2243_v53 = vld [vmem:[#allocation21] ss:$0 sm:$0xff] }
 0x62c   : > { %v1248_v55 = vmul.f32 1.442695, %v1246_v54  ;;  %v1242_v31 = vmul.f32 1.442695, %v1240_v30 }
 0x62e   : > { %2659 = vpow2.f32 %v1248_v55 }
 0x638   : > { %v2660_v61 = vpop.eup %2659 }
 0x639   : > { %v1262_v1 = vpack.c.bf16 %v2660_v61, %v2660_v61  ;;  %v1254_v6 = vsel %vm877_vm3, %v2660_v61, 0.0 }
 0x689   : > { %v3818_v44 = vpop.f32.mrb[4].mxu0 }
 0x68a   : > { %v2343_v45 = vpop.f32.mrb[5].mxu0  ;;  %v1369_v7 = vmul.f32 %v3818_v44, %v3818_v44 }
 0x68b   : > { %v1101_v46 = vpop.f32.mrb[6].mxu0 }
 0x68c   : > { %v2344_v47 = vpop.f32.mrb[7].mxu0 }
 0x691   : > { %v1228_v48 = vpop.f32.mrb[8].mxu0 }
 0x692   : > { %v2355_v49 = vpop.f32.mrb[9].mxu0  ;;  %v1237_v50 = vsel %vm877_vm3, %v1228_v48, -inf }
 0x693   : > { %1238 = vmax.xlane.f32.xlu1 %v1237_v50  ;;  %v1231_v51 = vpop.f32.mrb[10].mxu0 }
 0x694   : > { %v2356_v52 = vpop.f32.mrb[11].mxu0  ;;  %v2627_v51 = vld [vmem:[#allocation22] sm:$0xff]  }
 0x695   : > { %v2628_v52 = vld [vmem:[#allocation22 + $0x8] sm:$0xff]  }
 0x6a4   : > { %1129 = vrot.lane.b32.xlu1 %v3786_v57, %s3219_s24  ;;  %s3105_s24 = sshll.u32 %s3221_s29, 4  ;;  %s3106_s24 = int_to_ptr.vmem [resolvable:$false] %s3105_s24 }
 0x6a5   : > { %p3108_p10 = scmp.lt.s32.totalorder %s3892_s3, %s3106_s24 }
 0x720   : > { %v1239_v56 = vpop.xlane.xlu1 %1238 }
 0x721   : > { %v1247_v58 = vsub.f32 %v1228_v48, %v1239_v56  ;;  %v1241_v8 = vsub.f32 -inf, %v1239_v56 }
 0x723   : > { %v1250_v59 = vmul.f32 1.442695, %v1247_v58  ;;  %v1244_v9 = vmul.f32 1.442695, %v1241_v8  ;;  %v2629_v8 = vld [vmem:[#allocation25] sm:$0xff]  }
 0x724   : > { %v1130_v60 = vpop.permute.xlu1 %1129 }
 0x725   : > { %1135 = vst.msk [vmem:[#allocation6] sm:$0xf] %vm1126_vm4, %v1130_v60  ;;  %2661 = vpow2.f32 %v1250_v59 }
 0x726   : > { %2663 = vpow2.f32 %v1244_v9  ;;  %v2630_v9 = vld [vmem:[#allocation25 + $0x8] sm:$0xff]  }
 0x72c   : > { %v1139_v62 = vld [vmem:[#allocation6] sm:$0xf] }
 0x72d   : > { %v1269_v63 = vsel %vm1267_vm6, %v1139_v62, 0 }
 0x72e   : > { %2358 = vmatpush3.bf16.msra.mxu1 %v1269_v63 }
 0x72f   : > { %2369 = vmatprep.subr.mxu1 %v3214_v4  ;;  %v2662_v57 = vpop.eup %2661 }
 0x730   : > { %v1257_v2 = vsel %vm877_vm3, %v2662_v57, 0.0  ;;  %v1263_v3 = vpack.c.bf16 %v2662_v57, %v2662_v57  ;;  %v2664_v10 = vpop.eup %2663 }
 0x731   : > { %2360 = vmatmul.mubr.msk.bf16.vlgmr.msra.gmra.mrb[16].mxu1 %vm877_vm3, %v1262_v1  ;;  %1258 = vadd.xlane.f32.xlu0 %v1257_v2  ;;  %v1253_v12 = vmul.f32 0.0, %v2664_v10 }
 0x732   : > { %2371 = vmatprep.mubr.msk.f32.mxu1 %vm3215_vm1, %v3214_v4  ;;  %2366 = vmatmul.mubr.msk.bf16.vlgmr.msra.gmra.mrb[12].mxu0 %vm877_vm3, %v1263_v3 }
 0x733   : > { %2393 = vmatprep.mubr.msk.bf16.mxu0 %vm3215_vm1, %v3214_v4  ;;  %2390 = vmatpush3.bf16.msra.mxu0 %v2627_v51 }
 0x734   : > { %2391 = vmatprep.subr.bf16.mxu0 %v3214_v4 }
 0x735   : > { %1255 = vadd.xlane.f32.xlu0 %v1254_v6 }
 0x737   : > { %2370 = vmatpush3.xpose.msk.msra.mxu1 %vm703_vm0, %v700_v5  ;;  %2392 = vmatpush3.bf16.msra.mxu0 %v2628_v52 }
 0x738   : > { %2374 = vmatprep.subr.mxu1 %v3214_v4  ;;  %2405 = vmatprep.subr.bf16.mxu0 %v3214_v4 }
 0x73a   : > { %2372 = vmatmul.mubr.msk.f32.vlgmr.msra.gmra.mrb[10].mxu1 %vm703_vm0, %v1369_v7 }
 0x73b   : > { %2376 = vmatprep.mubr.msk.f32.mxu1 %vm3215_vm1, %v3214_v4  ;;  %2375 = vmatpush3.msk.msra.mxu1 %vm1453_vm7, %v700_v5 }
 0x73c   : > { %2379 = vmatprep.subr.mxu1 %v3214_v4 }
 0x7be   : > { %v1259_v11 = vpop.xlane.xlu0 %1258 }
 0x7bf   : > { %v1261_v13 = vadd.f32 %v1259_v11, %v1253_v12 }
 0x7c1   : > { %2665 = vrcp.f32 %v1261_v13  ;;  %v2247_v13 = vld [vmem:[#allocation24] ss:$0 sm:$0xff] }
 0x7c2   : > { %v1256_v33 = vpop.xlane.xlu0 %1255 }
 0x7cb   : > { %v2666_v21 = vpop.eup %2665 }
 0x804   : > { %v1305_v14 = vpop.f32.mrb[16].mxu1 }
 0x805   : > { %v2361_v15 = vpop.f32.mrb[17].mxu1  ;;  %v1351_v16 = vpop.f32.mrb[12].mxu0 }
 0x806   : > { %v1308_v17 = vpop.f32.mrb[18].mxu1  ;;  %v1358_v18 = vadd.f32 %v1351_v16, %v1253_v12  ;;  %v2367_v19 = vpop.f32.mrb[13].mxu0 }
 0x807   : > { %v2362_v20 = vpop.f32.mrb[19].mxu1  ;;  %v1354_v22 = vpop.f32.mrb[14].mxu0  ;;  %v2631_v17 = vld [vmem:[#allocation28] sm:$0xff]   ;;  %v2633_v19 = vld [vmem:[#allocation28 + $0x10] sm:$0xff]  }
 0x808   : > { %v1362_v23 = vmul.f32 %v2666_v21, %v1358_v18  ;;  %v2368_v24 = vpop.f32.mrb[15].mxu0  ;;  %v2632_v18 = vld [vmem:[#allocation28 + $0x8] sm:$0xff]   ;;  %v2634_v20 = vld [vmem:[#allocation28 + $0x18] sm:$0xff]   ;;  %v2635_v21 = vld [vmem:[#allocation28 + $0x20] sm:$0xff]  }
 0x809   : > { %v2636_v22 = vld [vmem:[#allocation28 + $0x28] sm:$0xff]   ;;  %v2638_v24 = vld [vmem:[#allocation28 + $0x38] sm:$0xff]  }
 0x80a   : > { %1364 = vrot.lane.b32.xlu0 %v1362_v23, %s3220_s23  ;;  %v2637_v23 = vld [vmem:[#allocation28 + $0x30] sm:$0xff]   ;;  %s3107_s23 = scalar_lea.vmem %s3106_s24, 256 }
 0x80b   : > { %p3109_p11 = scmp.lt.s32.totalorder %s3107_s23, %s3101_s26 }
 0x80d   : > { %v1442_v25 = vpop.f32.mrb[10].mxu1  ;;  %p3110_p6 = por %p3109_p11, %p3108_p10 }
 0x80e   : > { %v1446_v26 = vmax.f32 %v1442_v25, 1e-24  ;;  %v2373_v27 = vpop.f32.mrb[11].mxu1  ;;  %v2248_v25 = vld [vmem:[#allocation27] ss:$0 sm:$0xff] }
 0x80f   : > { %p3111_p12 = pnand %p3110_p6, %p3104_p8 }
 0x810   : > { %2667 = vrsqrt.f32 %v1446_v26 }
 0x811   : > { %2669 = vpow2.f32 %v1242_v31 }
 0x81a   : > { %v2668_v28 = vpop.eup %2667 }
 0x81b   : > { %v1448_v29 = vmul.f32 4.0, %v2668_v28  ;;  %v2670_v32 = vpop.eup %2669 }
 0x81c   : > { %v1252_v34 = vmul.f32 0.0, %v2670_v32 }
 0x81d   : > { %2377 = vmatmul.mubr.msk.f32.vlgmr.msra.gmra.mrb[20].mxu1 %vm1449_vm8, %v1448_v29 }
 0x81e   : > { %2380 = vmatpush3.xpose.msk.msra.mxu1 %vm703_vm0, %v700_v5  ;;  %2381 = vmatprep.mubr.msk.f32.mxu1 %vm3215_vm1, %v3214_v4  ;;  %v1260_v35 = vadd.f32 %v1256_v33, %v1252_v34  ;;  %v1357_v36 = vadd.f32 %v1305_v14, %v1252_v34 }
 0x81f   : > { %2384 = vmatprep.subr.mxu1 %v3214_v4 }
 0x820   : > { %2671 = vrcp.f32 %v1260_v35 }
 0x82a   : > { %v2672_v37 = vpop.eup %2671 }
 0x82b   : > { %v1361_v38 = vmul.f32 %v2672_v37, %v1357_v36 }
 0x87c   : > { %v1365_v39 = vpop.permute.xlu0 %1364 }
 0x87d   : > { %v1367_v40 = vsel %vm1141_vm5, %v1361_v38, %v1365_v39 }
 0x87e   : > { %v1536_v41 = vmul.f32 %v1367_v40, %v1367_v40 }
 0x880   : > { %2382 = vmatmul.mubr.msk.f32.vlgmr.msra.gmra.mrb[22].mxu1 %vm703_vm0, %v1536_v41 }
 0x881   : > { %2385 = vmatpush3.msk.msra.mxu1 %vm1453_vm7, %v700_v5  ;;  %2386 = vmatprep.mubr.msk.f32.mxu1 %vm3215_vm1, %v3214_v4 }
 0x882   : > { %2397 = vmatprep.subr.bf16.mxu1 %v3214_v4 }
 0x8f0   : > { %v1522_v42 = vpop.f32.mrb[20].mxu1 }
 0x8f1   : > { %v1526_v43 = vmul.f32 %v1522_v42, %v3818_v44  ;;  %v2378_v45 = vpop.f32.mrb[21].mxu1  ;;  %v2238_v44 = vld [vmem:[#allocation19] ss:$0 sm:$0xff] }
 0x8f3   : > { %v1533_v55 = vmul.f32 %v2238_v44, %v1526_v43 }
 0x8f5   : > { %v1534_v60 = vmul.f32 0.5, %v1533_v55 }
 0x953   : > { %v1606_v46 = vpop.f32.mrb[22].mxu1 }
 0x954   : > { %v1610_v47 = vmax.f32 %v1606_v46, 1e-24  ;;  %v2383_v48 = vpop.f32.mrb[23].mxu1 }
 0x956   : > { %2673 = vrsqrt.f32 %v1610_v47 }
 0x960   : > { %v2674_v49 = vpop.eup %2673 }
 0x961   : > { %v1612_v50 = vmul.f32 4.0, %v2674_v49 }
 0x963   : > { %2387 = vmatmul.mubr.msk.f32.vlgmr.msra.gmra.mrb[24].mxu1 %vm1449_vm8, %v1612_v50 }
 0x964   : > { %2401 = vmatprep.mubr.msk.bf16.mxu1 %vm3215_vm1, %v3214_v4  ;;  %2398 = vmatpush3.bf16.msra.mxu1 %v2629_v8 }
 0x965   : > { %2399 = vmatprep.subr.bf16.mxu1 %v3214_v4 }
 0x968   : > { %2400 = vmatpush3.bf16.msra.mxu1 %v2630_v9 }
 0xa36   : > { %v1682_v54 = vpop.f32.mrb[24].mxu1 }
 0xa37   : > { %v1686_v56 = vmul.f32 %v1682_v54, %v1367_v40  ;;  %v2388_v58 = vpop.f32.mrb[25].mxu1  ;;  %v2252_v40 = vld [vmem:[#allocation30] ss:$0 sm:$0xff] }
 0xa39   : > { %v1693_v59 = vmul.f32 %v2243_v53, %v1686_v56 }
 0xa3b   : > { %v1694_v61 = vmul.f32 0.5, %v1693_v59 }
 0xa3d   : > { %v1695_v62 = vadd.f32 %v1694_v61, %v1534_v60 }
 0xa3f   : > { %v1696_v63 = vpack.c.bf16 %v1695_v62, %v1695_v62 }
 0xa41   : > { %2394 = vmatmul.mubr.msk.bf16.vlgmr.msra.gmra.mrb[16].mxu0 %vm703_vm0, %v1696_v63 }
 0xa42   : > { %2421 = vmatprep.mubr.msk.bf16.mxu0 %vm3215_vm1, %v3214_v4  ;;  %2406 = vmatpush3.bf16.msra.mxu0 %v2631_v17 }
 0xa43   : > { %2407 = vmatprep.subr.bf16.mxu0 %v3214_v4 }
 0xa46   : > { %2408 = vmatpush3.bf16.msra.mxu0 %v2632_v18 }
 0xa47   : > { %2409 = vmatprep.subr.bf16.mxu0 %v3214_v4 }
 0xa4a   : > { %2410 = vmatpush3.bf16.msra.mxu0 %v2633_v19 }
 0xa4b   : > { %2411 = vmatprep.subr.bf16.mxu0 %v3214_v4 }
 0xa4e   : > { %2412 = vmatpush3.bf16.msra.mxu0 %v2634_v20 }
 0xa4f   : > { %2413 = vmatprep.subr.bf16.mxu0 %v3214_v4 }
 0xa52   : > { %2414 = vmatpush3.bf16.msra.mxu0 %v2635_v21 }
 0xa53   : > { %2415 = vmatprep.subr.bf16.mxu0 %v3214_v4 }
 0xa56   : > { %2416 = vmatpush3.bf16.msra.mxu0 %v2636_v22 }
 0xa57   : > { %2417 = vmatprep.subr.bf16.mxu0 %v3214_v4 }
 0xa5a   : > { %2418 = vmatpush3.bf16.msra.mxu0 %v2637_v23 }
 0xa5b   : > { %2419 = vmatprep.subr.bf16.mxu0 %v3214_v4 }
 0xa5e   : > { %2420 = vmatpush3.bf16.msra.mxu0 %v2638_v24 }
 0xb14   : > { %v1750_v1 = vpop.f32.mrb[16].mxu0 }
 0xb15   : > { %v3868_v57 = vadd.f32 %v1750_v1, %v3748_v0  ;;  %v2395_v2 = vpop.f32.mrb[17].mxu0 }
 0xb16   : > { %v1753_v3 = vpop.f32.mrb[18].mxu0 }
 0xb17   : > { %v2396_v5 = vpop.f32.mrb[19].mxu0  ;;  %v1758_v6 = vmul.f32 %v3868_v57, %v3868_v57 }
 0xb19   : > { %v1759_v7 = vsel %vm703_vm0, %v1758_v6, 0.0 }
 0xb1a   : > { %1760 = vadd.xlane.f32.xlu1 %v1759_v7 }
 0xba7   : > { %v1761_v10 = vpop.xlane.xlu1 %1760 }
 0xba8   : > { %v1762_v11 = vmax.f32 %v1761_v10, 1e-24 }
 0xbaa   : > { %2675 = vrsqrt.f32 %v1762_v11 }
 0xbb4   : > { %v2676_v0 = vpop.eup %2675 }
 0xbb5   : > { %v1764_v12 = vmul.f32 5.656854, %v2676_v0 }
 0xbb7   : > { %v1765_v14 = vmul.f32 %v1764_v12, %v3868_v57 }
 0xbb9   : > { %v1772_v15 = vmul.f32 %v2247_v13, %v1765_v14 }
 0xbbb   : > { %v1773_v16 = vpack.c.bf16 %v1772_v15, %v1772_v15 }
 0xbbd   : > { %2402 = vmatmul.mubr.msk.bf16.vlgmr.msra.gmra.mrb[28].mxu1 %vm703_vm0, %v1773_v16 }
 0xc90   : > { %v1834_v26 = vpop.f32.mrb[28].mxu1 }
 0xc91   : > { %v1835_v27 = vadd.f32 %v2248_v25, %v1834_v26  ;;  %v2403_v28 = vpop.f32.mrb[29].mxu1 }
 0xc92   : > { %v1837_v29 = vpop.f32.mrb[30].mxu1 }
 0xc93   : > { %v1840_v30 = vmul.f32 %v1835_v27, %v1835_v27  ;;  %v2404_v31 = vpop.f32.mrb[31].mxu1 }
 0xc95   : > { %v1841_v32 = vmul.f32 %v1840_v30, %v1835_v27 }
 0xc97   : > { %v1842_v33 = vmul.f32 0.044715, %v1841_v32 }
 0xc99   : > { %v1843_v34 = vadd.f32 %v1842_v33, %v1835_v27 }
 0xc9b   : > { %v1844_v35 = vmul.f32 0.7978846, %v1843_v34 }
 0xc9d   : > { %2677 = vtanh.f32 %v1844_v35 }
 0xca7   : > { %v2678_v36 = vpop.eup %2677 }
 0xca8   : > { %v1846_v37 = vadd.f32 1.0, %v2678_v36 }
 0xcaa   : > { %v1847_v38 = vmul.f32 0.5, %v1846_v37 }
 0xcac   : > { %v1848_v39 = vmul.f32 %v1847_v38, %v1835_v27 }
 0xcae   : > { %v1849_v4 = vpack.c.bf16 %v1848_v39, %v1848_v39 }
 0xcb0   : > { %2422 = vmatmul.mubr.bf16.vlgmr.msra.gmra.mrb[20].mxu0 %v1849_v4 }
 0xd83   : > { %v1955_v41 = vpop.f32.mrb[20].mxu0 }
 0xd84   : > { %v1956_v42 = vadd.f32 %v2252_v40, %v1955_v41  ;;  %v2423_v43 = vpop.f32.mrb[21].mxu0 }
 0xd85   : > { %v1958_v45 = vpop.f32.mrb[22].mxu0 }
 0xd86   : > { %v1961_v46 = vadd.f32 %v1956_v42, %v3868_v57  ;;  %v2424_v47 = vpop.f32.mrb[23].mxu0 }
 0xd88   : > { %1962 = vst.msk [vmem:[%s696_s18] sm:$0xff] %vm703_vm0, %v1961_v46 }
 0xd89   : > { %3114 = shalt.err (!%p3111_p12)
}
 0xd8a   : > { %s3115_s16 = scalar_lea.hbm %s3890_s0, 128  ;;  %s3119_s17 = scalar_lea.hbm %s4005_s22, 256 }
 0xd8b   : > { %p3116_p5 = scmp.ne.s32.totalorder %s3890_s0, %s3115_s16  ;;  %p3120_p1 = scmp.lt.u32.totalorder %s3890_s0, %s4005_s22 }
 0xd8c   : > { %p3121_p3 = scmp.lt.u32.totalorder %s3119_s17, %s3115_s16  ;;  %p3123_p13 = scmp.lt.u32.totalorder %s3115_s16, %s3890_s0 }
 0xd8d   : > { %p3117_p7 = pnand %p3116_p5, %p4006_p0 }
 0xd8e   : > { %p3122_p9 = por %p3121_p3, %p3120_p1 }
 0xd8f   : > { %p3118_p4 = pneg %p3117_p7 }
 0xd90   : > { %p3124_p2 = por %p3123_p13, %p3122_p9 }
 0xd92   : > { %p3125_p8 = pnand %p3124_p2, %p3118_p4 }
 0xd94   : > { %3128 = shalt.err (!%p3125_p8)
}
 0xd95   : > { %2483 = dma.vmem_to_hbm [thread:$0]  (%p4006_p0), %s3892_s3, 128, %s3890_s0, %s1964_s20  }
 0xd96 PF: > { %s4007_s26 = sld [smem:[#allocation41_spill]]  ;;  %p4008_p10 = scmp.ne.s32.totalorder %s3984_s27, 0 }
 0xd97   : > { %p4009_p11 = scmp.ge.s32.totalorder %s3195_s21, 2 }
 0xd99   : > { %p2533_p6 = pnand %p4009_p11, %p4008_p10 }
 0xd9c   : > { %s1989_s24 = sand.u32 1, %s4007_s26  }
 0xd9d   : > { %s1990_s23 = scalar_lea.sflag [#allocation9], %s1989_s24 }
 0xd9e   : > { %3178 = dma.done.wait (!%p2533_p6), %s1990_s23, 128  }
 0xd9f   : > { %3180 = vsyncadd (!%p2533_p6), %s1990_s23, 4294967168  ;;  %s4010_s18 = sld [smem:[#allocation42_spill]]  ;;  %s4011_s19 = sld [smem:[#allocation43_spill]] }
 0xda0   : > { %p35_p12 = scmp.ge.s32.totalorder %s3634_s28, 4   ;;  %s4012_s20 = smov %s3645_s1 }
 0xda1   : > { %s4013_s21 = smov %s3634_s28 }
 0xda2   :  { %37 = sbr.rel (!%p35_p12) target bundleno = 17 (0x11), region = 181 }
 0xda9   :  { %1995 = vsyncpa [#allocation8], 1 }
 0xdaa   :  { %1997 = vsyncpa [#allocation8 + $0x1], 1 }
 0xdab   :  { %1998 = vsyncpa [#allocation11], 1 }
 0xdac   :  { %1999 = vsyncpa [#allocation14], 1 }
 0xdad   :  { %2000 = vsyncpa [#allocation17], 1 }
 0xdae   :  { %2001 = vsyncpa [#allocation20], 1 }
 0xdaf   :  { %2002 = vsyncpa [#allocation23], 1 }
 0xdb0   :  { %2003 = vsyncpa [#allocation26], 1 }
 0xdb1   :  { %2004 = vsyncpa [#allocation29], 1 }
 0xdb2   :  { %2005 = vsyncpa [#allocation9], 1 }
 0xdb3   :  { %2007 = vsyncpa [#allocation9 + $0x1], 1 }

</bundles_post_ra>
